<compile_context>
chip_gen: v7x
topology: tpu7x:2x2x1
jax: 0.10.0
libtpu: 0.0.40
codegen_flags: <defaults>
</compile_context>

<pallas_src>
import functools

import jax
import jax.numpy as jnp
from jax import lax
from jax.experimental import pallas as pl
from jax.experimental.pallas import tpu as pltpu

IN_FEATURES = 39200    # fixed by the PyTorch module
OUT_FEATURES = 25      # fixed by the PyTorch module
DEFAULT_TILE_K = 8192  # 5 grid steps for K=39200 (padded to 40960)


def _mlp_kernel(x_ref, w1_ref, b1_ref, w2_ref, b2_ref, w3_ref, b3_ref,
                o_ref, acc_ref):
    k = pl.program_id(0)

    @pl.when(k == 0)
    def _():
        acc_ref[...] = jnp.zeros_like(acc_ref)

    # x tile: (B, tile_k); W1 tile: (H, tile_k), lane-dense PyTorch layout.
    # Contract the shared K axis -> (B, H) partial, accumulated in f32.
    # Zero-padded K tail contributes nothing.
    acc_ref[...] += lax.dot_general(
        x_ref[...], w1_ref[...],
        dimension_numbers=(((1,), (1,)), ((), ())),
        preferred_element_type=jnp.float32)

    @pl.when(k == pl.num_programs(0) - 1)
    def _():
        h1 = jnp.maximum(acc_ref[...] + b1_ref[...], 0.0)                    # Linear1 + ReLU
        h2 = jnp.dot(h1, w2_ref[...], preferred_element_type=jnp.float32)
        h2 = jnp.maximum(h2 + b2_ref[...], 0.0)                              # Linear2 + ReLU
        h3 = jnp.dot(h2, w3_ref[...], preferred_element_type=jnp.float32)
        o_ref[...] = (h3 + b3_ref[...]).astype(o_ref.dtype)                  # Linear3


def prepare_params(w1, b1, w2, b2, w3, b3, *, tile_k=DEFAULT_TILE_K):
    """One-time conversion of PyTorch-layout params (call OUTSIDE the hot path).

    w1 (H, K) stays in its native, lane-dense (out_features, in_features)
    layout and is K-padded once here; w2/w3 are transposed to (in, out) so the
    tiny epilogue matmuls are plain `h @ W`; biases become (1, n) rows.
    """
    _, K = w1.shape
    k_pad = pl.cdiv(K, tile_k) * tile_k
    w1_p = jnp.pad(w1, ((0, 0), (0, k_pad - K)))
    return (w1_p, b1.reshape(1, -1), w2.T, b2.reshape(1, -1),
            w3.T, b3.reshape(1, -1))


@functools.partial(jax.jit, static_argnames=("tile_k",))
def aps_encoder_forward(x, w1_p, b1, w2, b2, w3, b3, *, tile_k=DEFAULT_TILE_K):
    B, K = x.shape
    H, k_pad = w1_p.shape
    O = w3.shape[1]
    assert k_pad % tile_k == 0 and k_pad >= K
    num_k = k_pad // tile_k

    # Only x (tiny: B x K) is padded per call; W1 was padded once at prep time.
    x_p = jnp.pad(x, ((0, 0), (0, k_pad - K)))

    grid_spec = pltpu.PrefetchScalarGridSpec(
        num_scalar_prefetch=0,
        grid=(num_k,),
        in_specs=[
            pl.BlockSpec((B, tile_k), lambda k: (0, k)),   # x tile
            pl.BlockSpec((H, tile_k), lambda k: (0, k)),   # W1 tile (lane-dense)
            pl.BlockSpec((1, H), lambda k: (0, 0)),        # b1 (resident)
            pl.BlockSpec((H, H), lambda k: (0, 0)),        # W2 (resident)
            pl.BlockSpec((1, H), lambda k: (0, 0)),        # b2 (resident)
            pl.BlockSpec((H, O), lambda k: (0, 0)),        # W3 (resident)
            pl.BlockSpec((1, O), lambda k: (0, 0)),        # b3 (resident)
        ],
        out_specs=pl.BlockSpec((B, O), lambda k: (0, 0)),
        scratch_shapes=[pltpu.VMEM((B, H), jnp.float32)],
    )

    return pl.pallas_call(
        _mlp_kernel,
        out_shape=jax.ShapeDtypeStruct((B, O), x.dtype),
        grid_spec=grid_spec,
        compiler_params=pltpu.CompilerParams(
            dimension_semantics=("arbitrary",)),
    )(x_p, w1_p, b1, w2, b2, w3, b3)


def _init_params(key, hidden_dim):
    # Deterministic synthetic init, PyTorch layout: W is (out_features, in_features).
    ks = jax.random.split(key, 6)

    def lin(kw, kb, fan_in, fan_out):
        bound = 1.0 / jnp.sqrt(fan_in)
        w = jax.random.uniform(kw, (fan_out, fan_in), jnp.float32, -bound, bound)
        b = jax.random.uniform(kb, (fan_out,), jnp.float32, -bound, bound)
        return w, b

    w1, b1 = lin(ks[0], ks[1], IN_FEATURES, hidden_dim)
    w2, b2 = lin(ks[2], ks[3], hidden_dim, hidden_dim)
    w3, b3 = lin(ks[4], ks[5], hidden_dim, OUT_FEATURES)
    return w1, b1, w2, b2, w3, b3


def _reference(x, w1, b1, w2, b2, w3, b3):
    h = jnp.maximum(x @ w1.T + b1, 0.0)
    h = jnp.maximum(h @ w2.T + b2, 0.0)
    return h @ w3.T + b3


if __name__ == "__main__":
    key = jax.random.PRNGKey(0)
    k_x, k_p = jax.random.split(key)

    batch = 2
    hidden_dim = 32  # cfg['agent']['hidden_dim']

    x = jax.random.normal(k_x, (batch, IN_FEATURES), jnp.float32)
    params = _init_params(k_p, hidden_dim)

    kernel_params = prepare_params(*params)        # once, outside the hot path
    out = aps_encoder_forward(x, *kernel_params)
    out = jax.block_until_ready(out)

    ref = _reference(x, *params)
    assert out.shape == (batch, OUT_FEATURES)
    assert jnp.allclose(out, ref, atol=1e-3, rtol=1e-3), "mismatch vs reference"

    print("KERNEL_OK")
</pallas_src>

<mosaic_0001>
module attributes {stable_mosaic.version = 11 : i64} {
  func.func @_mlp_kernel(%arg0: i32, %arg1: memref<2x8192xf32, #tpu.memory_space<vmem>>, %arg2: memref<32x8192xf32, #tpu.memory_space<vmem>>, %arg3: memref<1x32xf32, #tpu.memory_space<vmem>>, %arg4: memref<32x32xf32, #tpu.memory_space<vmem>>, %arg5: memref<1x32xf32, #tpu.memory_space<vmem>>, %arg6: memref<32x25xf32, #tpu.memory_space<vmem>>, %arg7: memref<1x25xf32, #tpu.memory_space<vmem>>, %arg8: memref<2x25xf32, #tpu.memory_space<vmem>>, %arg9: memref<2x32xf32, #tpu.memory_space<vmem>>) attributes {dimension_semantics = [#tpu.dimension_semantics<arbitrary>], iteration_bounds = array<i64: 5>, scalar_prefetch = 0 : i64, scratch_operands = 1 : i64, tpu.core_type = #tpu.core_type<tc>, window_params = [{transform_indices = @transform_0, window_bounds = array<i64: 2, 8192>}, {transform_indices = @transform_1, window_bounds = array<i64: 32, 8192>}, {pipeline_mode = #tpu.pipeline_mode<synchronous>, transform_indices = @transform_2, window_bounds = array<i64: 1, 32>}, {pipeline_mode = #tpu.pipeline_mode<synchronous>, transform_indices = @transform_3, window_bounds = array<i64: 32, 32>}, {pipeline_mode = #tpu.pipeline_mode<synchronous>, transform_indices = @transform_4, window_bounds = array<i64: 1, 32>}, {pipeline_mode = #tpu.pipeline_mode<synchronous>, transform_indices = @transform_5, window_bounds = array<i64: 32, 25>}, {pipeline_mode = #tpu.pipeline_mode<synchronous>, transform_indices = @transform_6, window_bounds = array<i64: 1, 25>}, {pipeline_mode = #tpu.pipeline_mode<synchronous>, transform_indices = @transform_7, window_bounds = array<i64: 2, 25>}]} {
    %c0_i32 = arith.constant 0 : i32
    %0 = arith.cmpi eq, %arg0, %c0_i32 : i32
    %1 = arith.extui %0 : i1 to i32
    %c0_i32_0 = arith.constant 0 : i32
    %2 = arith.cmpi ne, %1, %c0_i32_0 : i32
    scf.if %2 {
      %cst_9 = arith.constant 0.000000e+00 : f32
      %12 = vector.broadcast %cst_9 : f32 to vector<2x32xf32>
      %c0_10 = arith.constant 0 : index
      %c0_11 = arith.constant 0 : index
      %13 = vector.load %arg9[%c0_10, %c0_11] : memref<2x32xf32, #tpu.memory_space<vmem>>, vector<2x32xf32>
      tpu.vector_store %arg9[%c0_10, %c0_11], %12 {strides = array<i32>} : memref<2x32xf32, #tpu.memory_space<vmem>>, vector<2x32xf32>,
    } else {
    }
    %c0 = arith.constant 0 : index
    %c0_1 = arith.constant 0 : index
    %3 = vector.load %arg9[%c0, %c0_1] : memref<2x32xf32, #tpu.memory_space<vmem>>, vector<2x32xf32>
    %c0_2 = arith.constant 0 : index
    %c0_3 = arith.constant 0 : index
    %4 = vector.load %arg1[%c0_2, %c0_3] : memref<2x8192xf32, #tpu.memory_space<vmem>>, vector<2x8192xf32>
    %c0_4 = arith.constant 0 : index
    %c0_5 = arith.constant 0 : index
    %5 = vector.load %arg2[%c0_4, %c0_5] : memref<32x8192xf32, #tpu.memory_space<vmem>>, vector<32x8192xf32>
    %cst = arith.constant dense<0.000000e+00> : vector<2x32xf32>
    %6 = tpu.matmul %4, %5, %cst {dimension_numbers = #tpu.dot_dimension_numbers<[1], [1], [0], [0], [0, 0, 1, 0], [], []>} : vector<2x8192xf32>, vector<32x8192xf32>, vector<2x32xf32> -> vector<2x32xf32>
    %7 = arith.addf %3, %6 : vector<2x32xf32>
    %c0_6 = arith.constant 0 : index
    %c0_7 = arith.constant 0 : index
    %8 = vector.load %arg9[%c0_6, %c0_7] : memref<2x32xf32, #tpu.memory_space<vmem>>, vector<2x32xf32>
    tpu.vector_store %arg9[%c0_6, %c0_7], %7 {strides = array<i32>} : memref<2x32xf32, #tpu.memory_space<vmem>>, vector<2x32xf32>,
    %c4_i32 = arith.constant 4 : i32
    %9 = arith.cmpi eq, %arg0, %c4_i32 : i32
    %10 = arith.extui %9 : i1 to i32
    %c0_i32_8 = arith.constant 0 : i32
    %11 = arith.cmpi ne, %10, %c0_i32_8 : i32
    scf.if %11 {
      %c0_9 = arith.constant 0 : index
      %c0_10 = arith.constant 0 : index
      %12 = vector.load %arg9[%c0_9, %c0_10] : memref<2x32xf32, #tpu.memory_space<vmem>>, vector<2x32xf32>
      %c0_11 = arith.constant 0 : index
      %c0_12 = arith.constant 0 : index
      %13 = vector.load %arg3[%c0_11, %c0_12] : memref<1x32xf32, #tpu.memory_space<vmem>>, vector<1x32xf32>
      %14 = vector.broadcast %13 : vector<1x32xf32> to vector<2x32xf32>
      %15 = arith.addf %12, %14 : vector<2x32xf32>
      %cst_13 = arith.constant 0.000000e+00 : f32
      %16 = vector.broadcast %cst_13 : f32 to vector<2x32xf32>
      %17 = arith.maximumf %15, %16 : vector<2x32xf32>
      %c0_14 = arith.constant 0 : index
      %c0_15 = arith.constant 0 : index
      %18 = vector.load %arg4[%c0_14, %c0_15] : memref<32x32xf32, #tpu.memory_space<vmem>>, vector<32x32xf32>
      %cst_16 = arith.constant dense<0.000000e+00> : vector<2x32xf32>
      %19 = tpu.matmul %17, %18, %cst_16 {dimension_numbers = #tpu.dot_dimension_numbers<[1], [0], [0], [1], [0, 0, 1, 1], [], []>} : vector<2x32xf32>, vector<32x32xf32>, vector<2x32xf32> -> vector<2x32xf32>
      %c0_17 = arith.constant 0 : index
      %c0_18 = arith.constant 0 : index
      %20 = vector.load %arg5[%c0_17, %c0_18] : memref<1x32xf32, #tpu.memory_space<vmem>>, vector<1x32xf32>
      %21 = vector.broadcast %20 : vector<1x32xf32> to vector<2x32xf32>
      %22 = arith.addf %19, %21 : vector<2x32xf32>
      %cst_19 = arith.constant 0.000000e+00 : f32
      %23 = vector.broadcast %cst_19 : f32 to vector<2x32xf32>
      %24 = arith.maximumf %22, %23 : vector<2x32xf32>
      %c0_20 = arith.constant 0 : index
      %c0_21 = arith.constant 0 : index
      %25 = vector.load %arg6[%c0_20, %c0_21] : memref<32x25xf32, #tpu.memory_space<vmem>>, vector<32x25xf32>
      %cst_22 = arith.constant dense<0.000000e+00> : vector<2x25xf32>
      %26 = tpu.matmul %24, %25, %cst_22 {dimension_numbers = #tpu.dot_dimension_numbers<[1], [0], [0], [1], [0, 0, 1, 1], [], []>} : vector<2x32xf32>, vector<32x25xf32>, vector<2x25xf32> -> vector<2x25xf32>
      %c0_23 = arith.constant 0 : index
      %c0_24 = arith.constant 0 : index
      %27 = vector.load %arg7[%c0_23, %c0_24] : memref<1x25xf32, #tpu.memory_space<vmem>>, vector<1x25xf32>
      %28 = vector.broadcast %27 : vector<1x25xf32> to vector<2x25xf32>
      %29 = arith.addf %26, %28 : vector<2x25xf32>
      %c0_25 = arith.constant 0 : index
      %c0_26 = arith.constant 0 : index
      %30 = vector.load %arg8[%c0_25, %c0_26] : memref<2x25xf32, #tpu.memory_space<vmem>>, vector<2x25xf32>
      tpu.vector_store %arg8[%c0_25, %c0_26], %29 {strides = array<i32>} : memref<2x25xf32, #tpu.memory_space<vmem>>, vector<2x25xf32>,
    } else {
    }
    return
  }
  func.func @transform_0(%arg0: i32) -> (i32, i32) {
    %c0_i32 = arith.constant 0 : i32
    %c0_i32_0 = arith.constant 0 : i32
    return %c0_i32, %arg0 : i32, i32
  }
  func.func @transform_1(%arg0: i32) -> (i32, i32) {
    %c0_i32 = arith.constant 0 : i32
    %c0_i32_0 = arith.constant 0 : i32
    return %c0_i32, %arg0 : i32, i32
  }
  func.func @transform_2(%arg0: i32) -> (i32, i32) {
    %c0_i32 = arith.constant 0 : i32
    %c0_i32_0 = arith.constant 0 : i32
    %c0_i32_1 = arith.constant 0 : i32
    return %c0_i32, %c0_i32_0 : i32, i32
  }
  func.func @transform_3(%arg0: i32) -> (i32, i32) {
    %c0_i32 = arith.constant 0 : i32
    %c0_i32_0 = arith.constant 0 : i32
    %c0_i32_1 = arith.constant 0 : i32
    return %c0_i32, %c0_i32_0 : i32, i32
  }
  func.func @transform_4(%arg0: i32) -> (i32, i32) {
    %c0_i32 = arith.constant 0 : i32
    %c0_i32_0 = arith.constant 0 : i32
    %c0_i32_1 = arith.constant 0 : i32
    return %c0_i32, %c0_i32_0 : i32, i32
  }
  func.func @transform_5(%arg0: i32) -> (i32, i32) {
    %c0_i32 = arith.constant 0 : i32
    %c0_i32_0 = arith.constant 0 : i32
    %c0_i32_1 = arith.constant 0 : i32
    return %c0_i32, %c0_i32_0 : i32, i32
  }
  func.func @transform_6(%arg0: i32) -> (i32, i32) {
    %c0_i32 = arith.constant 0 : i32
    %c0_i32_0 = arith.constant 0 : i32
    %c0_i32_1 = arith.constant 0 : i32
    return %c0_i32, %c0_i32_0 : i32, i32
  }
  func.func @transform_7(%arg0: i32) -> (i32, i32) {
    %c0_i32 = arith.constant 0 : i32
    %c0_i32_0 = arith.constant 0 : i32
    %c0_i32_1 = arith.constant 0 : i32
    return %c0_i32, %c0_i32_0 : i32, i32
  }
}

</mosaic_0001>

<bundles_post_ra>
// kernel: aps_encoder_forward.1
= control target key start
LH: loop header
LB: loop body
LE: loop exit
PB: predicated region body
PF: predicated region fallthrough
CT: control target
= control target key end

     0   :  { %s4893_s0 = inlined_call_operand.vmem [shape: f32[2,40960], index: 0, kind: input, shape index: {}]   ;;  %s4894_s1 = inlined_call_operand.hbm [shape: f32[32,40960], index: 1, kind: input, shape index: {}]   ;;  %s4895_s2 = inlined_call_operand.hbm [shape: f32[1,32], index: 2, kind: input, shape index: {}]   ;;  %s4896_s3 = inlined_call_operand.hbm [shape: f32[32,32], index: 3, kind: input, shape index: {}]   ;;  %s4897_s4 = inlined_call_operand.hbm [shape: f32[1,32], index: 4, kind: input, shape index: {}]   ;;  %s4898_s5 = inlined_call_operand.hbm [shape: f32[32,25], index: 5, kind: input, shape index: {}]   ;;  %s4899_s6 = inlined_call_operand.hbm [shape: f32[1,25], index: 6, kind: input, shape index: {}]   ;;  %s4900_s7 = inlined_call_operand.hbm [shape: f32[2,25], index: 7, kind: output, shape index: {}]  }
   0x1   :  { %4904 = sst [smem:[#allocation20_spill]] %s4895_s2 }
   0x2   :  { %12 = vsyncpa [#allocation4], 0 }
   0x3   :  { %14 = vsyncpa [#allocation4 + $0x1], 0 }
   0x4   :  { %15 = vsyncpa [#allocation7], 0 }
   0x5   :  { %16 = vsyncpa [#allocation10], 0 }
   0x6   :  { %17 = vsyncpa [#allocation13], 0 }
   0x7   :  { %18 = vsyncpa [#allocation5], 0  ;;  %s4312_s24 = smov 0   ;;  %s4314_s25 = smov 0  }
   0x8   :  { %s4316_s26 = smov 0   ;;  %s4318_s27 = smov 0  }
   0x9 LB: > { %s4331_s28 = sadd.s32 4294967295, %s4253_s27   ;;  %p70_p0 = scmp.ne.s32.totalorder %s4245_s25, %s4241_s24  ;;  %s4253_s27 = sphi %s4318_s27, %s4923_s27   ;;  %s4249_s26 = sphi %s4316_s26, %s4922_s26   ;;  %s4245_s25 = sphi %s4314_s25, %s4921_s25   ;;  %s4241_s24 = sphi %s4312_s24, %s4920_s24  }
   0xa   : > { %p4901_p1 = scmp.eq.s32.totalorder %s4331_s28, 0  ;;  %p3553_p2 = scmp.ge.s32.totalorder %s4253_s27, 1 }
   0xb   : > { %p207_p3 = scmp.lt.s32.totalorder %s4253_s27, 6  ;;  %s4255_s8 = smov [#allocation6]  }
   0xc   : > { %p4340_p5 = por %p4901_p1, %p70_p0  ;;  %s220_s9 = sshll.u32 %s4255_s8, 4  ;;  %s221_s9 = int_to_ptr.vmem [resolvable:$true] %s220_s9 }
   0xd   : > { %p4344_p6 = pnand %p3553_p2, %p207_p3  ;;  %s4256_s10 = smov [#allocation9]  }
   0xe   : > { %s4905_s29 = scalar_select %p4340_p5, 1, 0 }
   0xf   : > { %s4906_s30 = scalar_select %p4344_p6, 1, 0 }
  0x10   : > { %p3910_p7 = pneg %p4344_p6  ;;  %s244_s11 = sshll.u32 %s4256_s10, 4  ;;  %s4356_s11 = int_to_ptr.vmem [resolvable:$true] %s244_s11 }
  0x11   : > { %s4257_s13 = smov [#allocation8]   ;;  %s4908_s2 = sld [smem:[#allocation20_spill]] }
  0x12   : > { %p4352_p8 = pnand %p3910_p7, %p4901_p1  ;;  %s230_s14 = sshll.u32 %s4257_s13, 4  ;;  %s4358_s14 = int_to_ptr.vmem [resolvable:$true] %s230_s14 }
  0x14   : > { %p4368_p10 = pneg %p4352_p8 }
  0x17   : > { %s4007_s17 = scalar_lea.hbm %s4908_s2, 16 }
  0x18   : > { %p4008_p9 = scmp.ne.s32.totalorder %s4908_s2, %s4007_s17  ;;  %p4014_p13 = scmp.lt.u32.totalorder %s4007_s17, %s4908_s2 }
  0x1a   : > { %p4010_p11 = pnand %p4368_p10, %p4008_p9 }
  0x1c   : > { %p4011_p12 = pneg %p4010_p11 }
  0x1e   : > { %p4016_p0 = pnand %p4014_p13, %p4011_p12 }
  0x20   : > { %4019 = shalt.err (!%p4016_p0)
}
  0x21   : > { %s4020_s23 = scalar_lea.vmem %s221_s9, 16  ;;  %s4027_s24 = scalar_lea.vmem %s221_s9, 32 }
  0x22   : > { %p4021_p2 = scmp.ne.s32.totalorder %s221_s9, %s4020_s23  ;;  %p4028_p4 = scmp.lt.s32.totalorder %s221_s9, %s221_s9 }
  0x23   : > { %p4029_p1 = scmp.lt.s32.totalorder %s4027_s24, %s4020_s23 }
  0x24   : > { %p4023_p3 = pnand %p4021_p2, %p4368_p10 }
  0x25   : > { %p4030_p5 = por %p4029_p1, %p4028_p4 }
  0x26   : > { %p4024_p7 = pneg %p4023_p3 }
  0x28   : > { %p4031_p6 = pnand %p4030_p5, %p4024_p7 }
  0x2a   : > { %4034 = shalt.err (!%p4031_p6)
}
  0x2b   : > { %3913 = dma.hbm_to_vmem [thread:$0]  (!%p4352_p8), %s4908_s2, 16, %s221_s9, [#allocation7]  }
  0x2c   : > { %s4035_s16 = scalar_lea.hbm %s4897_s4, 16 }
  0x2d   : > { %p4036_p9 = scmp.ne.s32.totalorder %s4897_s4, %s4035_s16  ;;  %p4042_p4 = scmp.lt.u32.totalorder %s4035_s16, %s4897_s4 }
  0x2f   : > { %p4038_p11 = pnand %p4036_p9, %p4368_p10 }
  0x31   : > { %p4039_p1 = pneg %p4038_p11 }
  0x33   : > { %p4044_p5 = pnand %p4042_p4, %p4039_p1 }
  0x35   : > { %4047 = shalt.err (!%p4044_p5)
}
  0x36   : > { %s4048_s9 = scalar_lea.vmem %s4356_s11, 16  ;;  %s4055_s22 = scalar_lea.vmem %s4356_s11, 32 }
  0x37   : > { %p4049_p6 = scmp.ne.s32.totalorder %s4356_s11, %s4048_s9  ;;  %p4056_p0 = scmp.lt.s32.totalorder %s4356_s11, %s4356_s11 }
  0x38   : > { %p4057_p2 = scmp.lt.s32.totalorder %s4055_s22, %s4048_s9 }
  0x39   : > { %p4051_p12 = pnand %p4049_p6, %p4368_p10 }
  0x3a   : > { %p4058_p3 = por %p4057_p2, %p4056_p0 }
  0x3b   : > { %p4052_p13 = pneg %p4051_p12 }
  0x3d   : > { %p4059_p7 = pnand %p4058_p3, %p4052_p13 }
  0x3f   : > { %4062 = shalt.err (!%p4059_p7)
}
  0x40   : > { %3919 = dma.hbm_to_vmem [thread:$0]  (!%p4352_p8), %s4897_s4, 16, %s4356_s11, [#allocation10]  }
  0x41   : > { %s4063_s13 = scalar_lea.hbm %s4896_s3, 512 }
  0x42   : > { %p4064_p9 = scmp.ne.s32.totalorder %s4896_s3, %s4063_s13  ;;  %p4070_p4 = scmp.lt.u32.totalorder %s4063_s13, %s4896_s3 }
  0x44   : > { %p4066_p11 = pnand %p4064_p9, %p4368_p10 }
  0x46   : > { %p4067_p1 = pneg %p4066_p11 }
  0x48   : > { %p4072_p5 = pnand %p4070_p4, %p4067_p1 }
  0x4a   : > { %4075 = shalt.err (!%p4072_p5)
}
  0x4b   : > { %s4076_s11 = scalar_lea.vmem %s4358_s14, 512  ;;  %p4084_p0 = scmp.lt.s32.totalorder %s4358_s14, %s4358_s14 }
  0x4c   : > { %p4077_p6 = scmp.ne.s32.totalorder %s4358_s14, %s4076_s11  ;;  %p4085_p2 = scmp.lt.s32.totalorder %s4076_s11, %s4076_s11 }
  0x4e   : > { %p4079_p12 = pnand %p4077_p6, %p4368_p10  ;;  %p4086_p3 = por %p4085_p2, %p4084_p0 }
  0x50   : > { %p4080_p13 = pneg %p4079_p12 }
  0x52   : > { %p4087_p7 = pnand %p4086_p3, %p4080_p13 }
  0x54   : > { %4090 = shalt.err (!%p4087_p7)
}
  0x55   : > { %s4258_s19 = smov 128   ;;  %s4259_s21 = smov 8  }
  0x56   : > { %3916 = dma.hbm_to_vmem [thread:$0]  (!%p4352_p8), %s4896_s3, 512, %s4358_s14, [#allocation7], %s4258_s19, %s4258_s19, %s4259_s21  }
  0x57   : > { %s4260_s23 = smov [#allocation11]   ;;  %s4261_s8 = smov [#allocation12]  }
  0x58   : > { %s254_s24 = sshll.u32 %s4260_s23, 4  ;;  %s268_s10 = sshll.u32 %s4261_s8, 4  ;;  %s255_s24 = int_to_ptr.vmem [resolvable:$true] %s254_s24  ;;  %s269_s10 = int_to_ptr.vmem [resolvable:$true] %s268_s10 }
  0x59   : > { %s4091_s16 = scalar_lea.hbm %s4898_s5, 512 }
  0x5a   : > { %p4092_p9 = scmp.ne.s32.totalorder %s4898_s5, %s4091_s16  ;;  %p4098_p4 = scmp.lt.u32.totalorder %s4091_s16, %s4898_s5 }
  0x5c   : > { %p4094_p11 = pnand %p4092_p9, %p4368_p10 }
  0x5e   : > { %p4095_p1 = pneg %p4094_p11 }
  0x60   : > { %p4100_p5 = pnand %p4098_p4, %p4095_p1 }
  0x62   : > { %4103 = shalt.err (!%p4100_p5)
}
  0x63   : > { %s4104_s14 = scalar_lea.vmem %s255_s24, 512  ;;  %p4112_p0 = scmp.lt.s32.totalorder %s255_s24, %s255_s24 }
  0x64   : > { %p4105_p6 = scmp.ne.s32.totalorder %s255_s24, %s4104_s14  ;;  %p4113_p2 = scmp.lt.s32.totalorder %s4104_s14, %s4104_s14 }
  0x66   : > { %p4107_p12 = pnand %p4105_p6, %p4368_p10  ;;  %p4114_p3 = por %p4113_p2, %p4112_p0 }
  0x68   : > { %p4108_p13 = pneg %p4107_p12 }
  0x6a   : > { %p4115_p7 = pnand %p4114_p3, %p4108_p13 }
  0x6c   : > { %4118 = shalt.err (!%p4115_p7)
}
  0x6d   : > { %3922 = dma.hbm_to_vmem [thread:$0]  (!%p4352_p8), %s4898_s5, 512, %s255_s24, [#allocation10], %s4258_s19, %s4258_s19, %s4259_s21  }
  0x6e   : > { %s4119_s8 = scalar_lea.hbm %s4899_s6, 16 }
  0x6f   : > { %p4120_p9 = scmp.ne.s32.totalorder %s4899_s6, %s4119_s8  ;;  %p4126_p4 = scmp.lt.u32.totalorder %s4119_s8, %s4899_s6 }
  0x71   : > { %p4122_p11 = pnand %p4120_p9, %p4368_p10 }
  0x73   : > { %p4123_p1 = pneg %p4122_p11 }
  0x75   : > { %p4128_p5 = pnand %p4126_p4, %p4123_p1 }
  0x77   : > { %4131 = shalt.err (!%p4128_p5)
}
  0x78   : > { %s4132_s18 = scalar_lea.vmem %s269_s10, 16  ;;  %s4139_s19 = scalar_lea.vmem %s269_s10, 32 }
  0x79   : > { %p4133_p6 = scmp.ne.s32.totalorder %s269_s10, %s4132_s18  ;;  %p4140_p0 = scmp.lt.s32.totalorder %s269_s10, %s269_s10 }
  0x7a   : > { %p4141_p2 = scmp.lt.s32.totalorder %s4139_s19, %s4132_s18 }
  0x7b   : > { %p4135_p12 = pnand %p4133_p6, %p4368_p10 }
  0x7c   : > { %p4142_p3 = por %p4141_p2, %p4140_p0 }
  0x7d   : > { %p4136_p13 = pneg %p4135_p12 }
  0x7f   : > { %p4143_p7 = pnand %p4142_p3, %p4136_p13 }
  0x81   : > { %4146 = shalt.err (!%p4143_p7)
}
  0x82   : > { %3925 = dma.hbm_to_vmem [thread:$0]  (!%p4352_p8), %s4899_s6, 16, %s269_s10, [#allocation13]  }
  0x83   : > { %s4468_s20 = sadd.s32 1, %s4253_s27   ;;  %s57_s14 = sadd.s32 1, %s4249_s26 }
  0x84   : > { %s54_s11 = ssub.s32 %s4253_s27, %s4468_s20  ;;  %p64_p9 = scmp.ne.s32.totalorder %s4249_s26, %s4245_s25 }
  0x85   : > { %p55_p10 = scmp.eq.s32.totalorder %s54_s11, 0  ;;  %p65_p11 = scmp.eq.s32.totalorder %s4253_s27, 0 }
  0x86   : > { %p3935_p1 = scmp.lt.s32.totalorder %s4253_s27, 5  ;;  %s288_s9 = sand.u32 1, %s4249_s26  }
  0x87   : > { %s4478_s12 = scalar_select %p55_p10, %s4249_s26, %s57_s14  }
  0x88   : > { %p66_p4 = por %p65_p11, %p64_p9  ;;  %s3560_s22 = sshll.u32 %s288_s9, 11 }
  0x89   : > { %s3583_s2 = sshll.u32 %s4253_s27, 13  ;;  %s292_s10 = scalar_lea.vmem [#allocation3], %s3560_s22 }
  0x8a   : > { %s4485_s13 = scalar_lea.hbm %s4894_s1, %s3583_s2  ;;  %s299_s15 = sshll.u32 %s292_s10, 4  ;;  %s4487_s15 = int_to_ptr.vmem [resolvable:$true] %s299_s15 }
  0x8b   : > { %p4489_p8 = pnand %p3935_p1, %p66_p4  ;;  %s4493_s27 = scalar_lea.sflag [#allocation4], %s288_s9 }
  0x8c   : > { %s4147_s17 = scalar_lea.hbm %s4485_s13, 32768  ;;  %s4152_s21 = scalar_lea.hbm %s4894_s1, 163840 }
  0x8d   : > { %p4148_p5 = scmp.ne.s32.totalorder %s4485_s13, %s4147_s17  ;;  %p4149_p6 = pneg %p4489_p8 }
  0x8e   : > { %p4153_p0 = scmp.lt.u32.totalorder %s4485_s13, %s4894_s1  ;;  %p4154_p2 = scmp.lt.u32.totalorder %s4152_s21, %s4147_s17 }
  0x8f   : > { %p4150_p12 = pnand %p4149_p6, %p4148_p5  ;;  %p4156_p7 = scmp.lt.u32.totalorder %s4147_s17, %s4485_s13 }
  0x90   : > { %p4155_p3 = por %p4154_p2, %p4153_p0 }
  0x91   : > { %p4151_p13 = pneg %p4150_p12 }
  0x92   : > { %p4157_p10 = por %p4156_p7, %p4155_p3 }
  0x94   : > { %p4158_p9 = pnand %p4157_p10, %p4151_p13 }
  0x96   : > { %4161 = shalt.err (!%p4158_p9)
}
  0x97   : > { %s4162_s14 = scalar_lea.vmem %s4487_s15, 32768  ;;  %s4262_s9 = smov [#allocation3]  }
  0x98   : > { %p4163_p11 = scmp.ne.s32.totalorder %s4487_s15, %s4162_s14  ;;  %s4167_s22 = sshll.u32 %s4262_s9, 4  ;;  %s4168_s22 = int_to_ptr.vmem [resolvable:$false] %s4167_s22 }
  0x99   : > { %s4169_s2 = scalar_lea.vmem %s4168_s22, 65536  ;;  %p4170_p5 = scmp.lt.s32.totalorder %s4487_s15, %s4168_s22 }
  0x9a   : > { %p4165_p1 = pnand %p4163_p11, %p4149_p6  ;;  %p4171_p12 = scmp.lt.s32.totalorder %s4169_s2, %s4162_s14 }
  0x9c   : > { %p4166_p4 = pneg %p4165_p1  ;;  %p4172_p0 = por %p4171_p12, %p4170_p5 }
  0x9e   : > { %p4173_p2 = pnand %p4172_p0, %p4166_p4 }
  0xa0   : > { %4176 = shalt.err (!%p4173_p2)
}
  0xa1   : > { %s4263_s23 = smov 40960   ;;  %s4264_s8 = smov 8192  }
  0xa2   : > { %s4265_s10 = smov 512   ;;  %p4911_p6 = scmp.ne.s32.totalorder %s4906_s30, 0 }
  0xa3   : > { %3929 = dma.hbm_to_vmem [thread:$0]  (!%p4489_p8), %s4485_s13, 32768, %s4487_s15, %s4493_s27, %s4263_s23, %s4264_s8, %s4265_s10  }
  0xa4   : > { %311 = sbr.rel (%p4911_p6) target bundleno = 1136 (0x470), region = 48  ;;  %s313_s17 = sand.u32 (!%p4911_p6), 1, %s4245_s25  }
  0xa5   : > { %s3564_s18 = sshll.u32 (!%p4911_p6), %s313_s17, 11  ;;  %s314_s19 = scalar_lea.sflag (!%p4911_p6), [#allocation4], %s313_s17 }
  0xa6   : > { %s4524_s21 = scalar_lea.vmem (!%p4911_p6), [#allocation3], %s3564_s18  ;;  %p4912_p13 = scmp.ne.s32.totalorder (!%p4911_p6), %s4905_s29, 0 }
  0xab   : > { %4220 = dma.done.wait (%p4912_p13), %s314_s19, 32768  }
  0xac   : > { %4222 = vsyncadd (%p4912_p13), %s314_s19, 4294934528  ;;  %p4913_p3 = scmp.eq.s32.totalorder %s4331_s28, 0 }
  0xae   : > { %4224 = dma.done.wait (%p4913_p3), [#allocation7], 528   ;;  %p4914_p8 = pmov %p4913_p3 }
  0xaf   : > { %p4915_p7 = pmov %p4913_p3 }
  0xb0   : > { %4226 = vsyncadd (%p4914_p8), [#allocation7], 4294966768 }
  0xb1   : > { %4228 = dma.done.wait (%p4915_p7), [#allocation10], 528   ;;  %p4916_p10 = pmov %p4913_p3 }
  0xb2   : > { %p4917_p9 = pmov %p4913_p3 }
  0xb3   : > { %4230 = vsyncadd (%p4916_p10), [#allocation10], 4294966768 }
  0xb4   : > { %4232 = dma.done.wait (%p4917_p9), [#allocation13], 16   ;;  %p4918_p11 = pmov %p4913_p3 }
  0xb5   : > { %s3570_s29 = sshll.u32 %s4331_s28, 6  ;;  %p4919_p4 = scmp.ne.s32.totalorder %s4331_s28, 0 }
  0xb6   : > { %4234 = vsyncadd (%p4918_p11), [#allocation13], 4294967280  ;;  %p369_p1 = scmp.lt.s32.totalorder %s3570_s29, 319  ;;  %vm379_vm0 = vcmask (!%p4919_p4), 254976   ;;  %v4266_v0 = vmov (!%p4919_p4), 0.0  }
  0xb7   : > { %378 = sbr.rel (%p4919_p4) target bundleno = 190 (0xbe), region = 76  ;;  %380 = vst.msk [vmem:[#allocation2] sm:$0x3] (!%p4919_p4), %vm379_vm0, %v4266_v0 }
  0xb8   : > { %s4925_s29 = smov (!%p369_p1, %s3570_s29), 319 }
  0xb9   : > { %s3571_s30 = sshll.u32 %s4925_s29, 1 }
  0xba   : > { %s4546_s16 = scalar_lea.vmem %s4893_s0, %s3571_s30 }
  0xbe PF: > { %v399_v1 = vld [vmem:[%s4524_s21 + $0x8] sm:$0xff]  ;;  %v398_v3 = vld [vmem:[%s4524_s21] sm:$0xff]  ;;  %v674_v4 = vlaneseq  ;;  %v401_v7 = vld [vmem:[%s4524_s21 + $0x18] sm:$0xff]  ;;  %v4267_v9 = vmov 1983009808   ;;  %vm3247_vm1 = vcmask 254976  }
  0xbf   : > { %v463_v2 = vld [vmem:[%s4524_s21 + $0x208] sm:$0xff]  ;;  %v462_v6 = vld [vmem:[%s4524_s21 + $0x200] sm:$0xff]  ;;  %v465_v8 = vld [vmem:[%s4524_s21 + $0x218] sm:$0xff]  ;;  %v672_v10 = vunpack.c.l.s4 %v4267_v9  ;;  %p3573_p5 = scmp.ne.s32.totalorder %s4331_s28, 4 }
  0xc0   : > { %v3616_v5 = vpack.c.bf16 %v463_v2, %v399_v1  ;;  %v3618_v11 = vpack.c.bf16 %v462_v6, %v398_v3  ;;  %v3624_v12 = vpack.c.bf16 %v465_v8, %v401_v7  ;;  %v400_v13 = vld [vmem:[%s4524_s21 + $0x10] sm:$0xff]  ;;  %v527_v15 = vld [vmem:[%s4524_s21 + $0x408] sm:$0xff]  ;;  %v675_v16 = vshrl.u32 %v674_v4, 7  ;;  %v526_v21 = vld [vmem:[%s4524_s21 + $0x400] sm:$0xff] }
  0xc1   : > { %v464_v14 = vld [vmem:[%s4524_s21 + $0x210] sm:$0xff]  ;;  %v591_v18 = vld [vmem:[%s4524_s21 + $0x608] sm:$0xff]  ;;  %v673_v19 = vunpack.c.0.s8 %v672_v10  ;;  %v529_v22 = vld [vmem:[%s4524_s21 + $0x418] sm:$0xff]  ;;  %vm4269_vm2 = vmmov (!%p3573_p5), 0   ;;  %vm3274_vm3 = vcmask (!%p3573_p5), 261120   ;;  %vm3433_vm4 = vcmask (!%p3573_p5), 197632  }
  0xc2   : > { %3617 = vmatprep.subr.bf16.mxu0 %v3616_v5  ;;  %v3626_v17 = vpack.c.bf16 %v464_v14, %v400_v13  ;;  %3625 = vmatprep.subr.bf16.mxu1 %v3624_v12  ;;  %v3620_v20 = vpack.c.bf16 %v591_v18, %v527_v15  ;;  %v593_v23 = vld [vmem:[%s4524_s21 + $0x618] sm:$0xff]  ;;  %v590_v24 = vld [vmem:[%s4524_s21 + $0x600] sm:$0xff]  ;;  %v528_v26 = vld [vmem:[%s4524_s21 + $0x410] sm:$0xff] }
  0xc3   : > { %3619 = vmatpush1.bf16.xpose.msra.mxu0 %v3618_v11  ;;  %v3628_v25 = vpack.c.bf16 %v593_v23, %v529_v22  ;;  %v382_v27 = vld [vmem:[%s4546_s16] sm:$0xff]  ;;  %v4566_v28 = vsub.s32 %v673_v19, %v675_v16  ;;  %v592_v29 = vld [vmem:[%s4524_s21 + $0x610] sm:$0xff]  ;;  %v403_v31 = vld [vmem:[%s4524_s21 + $0x28] sm:$0xff]  ;;  %v3622_v36 = vpack.c.bf16 %v590_v24, %v526_v21 }
  0xc4   : > { %3627 = vmatpush1.bf16.xpose.msra.mxu1 %v3626_v17  ;;  %3621 = vmatprep.subr.bf16.mxu0 %v3620_v20  ;;  %v670_v30 = vcombine.high %v382_v27, %v382_v27  ;;  %v467_v32 = vld [vmem:[%s4524_s21 + $0x228] sm:$0xff]  ;;  %v405_v34 = vld [vmem:[%s4524_s21 + $0x38] sm:$0xff]  ;;  %v3630_v38 = vpack.c.bf16 %v592_v29, %v528_v26  ;;  %v402_v45 = vld [vmem:[%s4524_s21 + $0x20] sm:$0xff] }
  0xc5   : > { %3629 = vmatprep.subr.bf16.mxu1 %v3628_v25  ;;  %v677_v33 = vrot.slane %v382_v27, %v4566_v28  ;;  %v469_v35 = vld [vmem:[%s4524_s21 + $0x238] sm:$0xff]  ;;  %v3632_v40 = vpack.c.bf16 %v467_v32, %v403_v31  ;;  %v383_v43 = vld [vmem:[%s4546_s16 + $0x8] sm:$0xff]  ;;  %v404_v47 = vld [vmem:[%s4524_s21 + $0x30] sm:$0xff] }
  0xc6   : > { %v684_v37 = vrot.slane %v670_v30, %v4566_v28  ;;  %v3640_v42 = vpack.c.bf16 %v469_v35, %v405_v34  ;;  %v687_v44 = vcombine.high %v383_v43, %v383_v43  ;;  %v466_v46 = vld [vmem:[%s4524_s21 + $0x220] sm:$0xff]  ;;  %v468_v48 = vld [vmem:[%s4524_s21 + $0x230] sm:$0xff]  ;;  %v531_v49 = vld [vmem:[%s4524_s21 + $0x428] sm:$0xff]  ;;  %v694_v51 = vrot.slane %v383_v43, %v4566_v28 }
  0xc7   : > { %v685_v39 = vcombine.high %v677_v33, %v677_v33  ;;  %v595_v50 = vld [vmem:[%s4524_s21 + $0x628] sm:$0xff]  ;;  %v533_v52 = vld [vmem:[%s4524_s21 + $0x438] sm:$0xff]  ;;  %v3634_v55 = vpack.c.bf16 %v466_v46, %v402_v45  ;;  %v3642_v56 = vpack.c.bf16 %v468_v48, %v404_v47  ;;  %v530_v61 = vld [vmem:[%s4524_s21 + $0x420] sm:$0xff] }
  0xc8   : > { %v686_v41 = vcombine.high %v684_v37, %v684_v37  ;;  %v597_v53 = vld [vmem:[%s4524_s21 + $0x638] sm:$0xff]  ;;  %v701_v54 = vrot.slane %v687_v44, %v4566_v28  ;;  %v3636_v57 = vpack.c.bf16 %v595_v50, %v531_v49  ;;  %v702_v59 = vcombine.high %v694_v51, %v694_v51  ;;  %v594_v62 = vld [vmem:[%s4524_s21 + $0x620] sm:$0xff]  ;;  %v532_v63 = vld [vmem:[%s4524_s21 + $0x430] sm:$0xff] }
  0xc9   : > { %1070 = vmatprep.mubr.f32.mxu0 %v685_v39  ;;  %v3644_v58 = vpack.c.bf16 %v597_v53, %v533_v52  ;;  %v596_v0 = vld [vmem:[%s4524_s21 + $0x630] sm:$0xff]  ;;  %v407_v1 = vld [vmem:[%s4524_s21 + $0x48] sm:$0xff]  ;;  %v409_v3 = vld [vmem:[%s4524_s21 + $0x58] sm:$0xff]  ;;  %v3638_v5 = vpack.c.bf16 %v594_v62, %v530_v61 }
  0xca   : > { %1140 = vmatprep.mubr.f32.mxu1 %v686_v41  ;;  %v703_v60 = vcombine.high %v701_v54, %v701_v54  ;;  %v471_v2 = vld [vmem:[%s4524_s21 + $0x248] sm:$0xff]  ;;  %v473_v4 = vld [vmem:[%s4524_s21 + $0x258] sm:$0xff]  ;;  %v3646_v7 = vpack.c.bf16 %v596_v0, %v532_v63  ;;  %v406_v11 = vld [vmem:[%s4524_s21 + $0x40] sm:$0xff] }
  0xcb   : > { %3623 = vmatpush1.bf16.xpose.msra.mxu0 %v3622_v36  ;;  %v384_v6 = vld [vmem:[%s4546_s16 + $0x10] sm:$0xff]  ;;  %v3648_v8 = vpack.c.bf16 %v471_v2, %v407_v1  ;;  %v3656_v9 = vpack.c.bf16 %v473_v4, %v409_v3  ;;  %v470_v12 = vld [vmem:[%s4524_s21 + $0x240] sm:$0xff]  ;;  %v537_v18 = vld [vmem:[%s4524_s21 + $0x458] sm:$0xff] }
  0xcc   : > { %3631 = vmatpush1.bf16.xpose.msra.mxu1 %v3630_v38  ;;  %3633 = vmatprep.subr.bf16.mxu0 %v3632_v40  ;;  %v704_v10 = vcombine.high %v384_v6, %v384_v6  ;;  %v408_v13 = vld [vmem:[%s4524_s21 + $0x50] sm:$0xff]  ;;  %v535_v15 = vld [vmem:[%s4524_s21 + $0x448] sm:$0xff]  ;;  %v711_v17 = vrot.slane %v384_v6, %v4566_v28  ;;  %v601_v19 = vld [vmem:[%s4524_s21 + $0x658] sm:$0xff]  ;;  %v3650_v21 = vpack.c.bf16 %v470_v12, %v406_v11 }
  0xcd   : > { %3641 = vmatprep.subr.bf16.mxu1 %v3640_v42  ;;  %v472_v14 = vld [vmem:[%s4524_s21 + $0x250] sm:$0xff]  ;;  %v599_v16 = vld [vmem:[%s4524_s21 + $0x648] sm:$0xff]  ;;  %v3660_v24 = vpack.c.bf16 %v601_v19, %v537_v18  ;;  %v534_v27 = vld [vmem:[%s4524_s21 + $0x440] sm:$0xff] }
  0xce   : > { %v718_v20 = vrot.slane %v704_v10, %v4566_v28  ;;  %v3658_v22 = vpack.c.bf16 %v472_v14, %v408_v13  ;;  %v3652_v23 = vpack.c.bf16 %v599_v16, %v535_v15  ;;  %v719_v25 = vcombine.high %v711_v17, %v711_v17  ;;  %v598_v29 = vld [vmem:[%s4524_s21 + $0x640] sm:$0xff]  ;;  %v536_v30 = vld [vmem:[%s4524_s21 + $0x450] sm:$0xff]  ;;  %v411_v32 = vld [vmem:[%s4524_s21 + $0x68] sm:$0xff] }
  0xcf   : > { %v600_v31 = vld [vmem:[%s4524_s21 + $0x650] sm:$0xff]  ;;  %v413_v34 = vld [vmem:[%s4524_s21 + $0x78] sm:$0xff]  ;;  %v3654_v36 = vpack.c.bf16 %v598_v29, %v534_v27  ;;  %v410_v42 = vld [vmem:[%s4524_s21 + $0x60] sm:$0xff] }
  0xd0   : > { %v720_v26 = vcombine.high %v718_v20, %v718_v20  ;;  %v477_v35 = vld [vmem:[%s4524_s21 + $0x278] sm:$0xff]  ;;  %v3662_v38 = vpack.c.bf16 %v600_v31, %v536_v30  ;;  %v474_v43 = vld [vmem:[%s4524_s21 + $0x260] sm:$0xff]  ;;  %v412_v44 = vld [vmem:[%s4524_s21 + $0x70] sm:$0xff] }
  0xd1   : > { %v3672_v40 = vpack.c.bf16 %v477_v35, %v413_v34  ;;  %v476_v45 = vld [vmem:[%s4524_s21 + $0x270] sm:$0xff]  ;;  %v539_v46 = vld [vmem:[%s4524_s21 + $0x468] sm:$0xff]  ;;  %v541_v49 = vld [vmem:[%s4524_s21 + $0x478] sm:$0xff]  ;;  %v3666_v52 = vpack.c.bf16 %v474_v43, %v410_v42 }
  0xd2   : > { %1071 = vmatmul.mubr.f32.vlgmr.msra.gmra.mrb[0].mxu0 %v677_v33  ;;  %v475_v33 = vld [vmem:[%s4524_s21 + $0x268] sm:$0xff]  ;;  %v605_v50 = vld [vmem:[%s4524_s21 + $0x678] sm:$0xff]  ;;  %v3674_v53 = vpack.c.bf16 %v476_v45, %v412_v44  ;;  %v604_v61 = vld [vmem:[%s4524_s21 + $0x670] sm:$0xff] }
  0xd3   : > { %1141 = vmatmul.mubr.f32.vlgmr.msra.gmra.mrb[0].mxu1 %v684_v37  ;;  %3635 = vmatpush1.bf16.xpose.msra.mxu0 %v3634_v55  ;;  %v385_v37 = vld [vmem:[%s4546_s16 + $0x18] sm:$0xff]  ;;  %v3664_v39 = vpack.c.bf16 %v475_v33, %v411_v32  ;;  %v603_v47 = vld [vmem:[%s4524_s21 + $0x668] sm:$0xff]  ;;  %v3676_v55 = vpack.c.bf16 %v605_v50, %v541_v49  ;;  %v386_v3 = vld [vmem:[%s4546_s16 + $0x20] sm:$0xff] }
  0xd4   : > { %3643 = vmatpush1.bf16.xpose.msra.mxu1 %v3642_v56  ;;  %3637 = vmatprep.subr.bf16.mxu0 %v3636_v57  ;;  %v721_v41 = vcombine.high %v385_v37, %v385_v37  ;;  %v728_v48 = vrot.slane %v385_v37, %v4566_v28  ;;  %v415_v62 = vld [vmem:[%s4524_s21 + $0x88] sm:$0xff]  ;;  %v417_v0 = vld [vmem:[%s4524_s21 + $0x98] sm:$0xff]  ;;  %v416_v10 = vld [vmem:[%s4524_s21 + $0x90] sm:$0xff]  ;;  %v745_v14 = vrot.slane %v386_v3, %v4566_v28 }
  0xd5   : > { %3645 = vmatprep.subr.bf16.mxu1 %v3644_v58  ;;  %1210 = vmatprep.mubr.f32.mxu0 %v702_v59  ;;  %v538_v58 = vld [vmem:[%s4524_s21 + $0x460] sm:$0xff]  ;;  %v479_v63 = vld [vmem:[%s4524_s21 + $0x288] sm:$0xff]  ;;  %v481_v1 = vld [vmem:[%s4524_s21 + $0x298] sm:$0xff] }
  0xd6   : > { %1280 = vmatprep.mubr.f32.mxu1 %v703_v60  ;;  %v736_v56 = vcombine.high %v728_v48, %v728_v48  ;;  %v602_v59 = vld [vmem:[%s4524_s21 + $0x660] sm:$0xff]  ;;  %v540_v60 = vld [vmem:[%s4524_s21 + $0x470] sm:$0xff]  ;;  %v3688_v6 = vpack.c.bf16 %v481_v1, %v417_v0  ;;  %v543_v12 = vld [vmem:[%s4524_s21 + $0x488] sm:$0xff] }
  0xd7   : > { %v3670_v2 = vpack.c.bf16 %v602_v59, %v538_v58  ;;  %v3678_v4 = vpack.c.bf16 %v604_v61, %v540_v60  ;;  %v480_v11 = vld [vmem:[%s4524_s21 + $0x290] sm:$0xff]  ;;  %v607_v13 = vld [vmem:[%s4524_s21 + $0x688] sm:$0xff]  ;;  %v545_v15 = vld [vmem:[%s4524_s21 + $0x498] sm:$0xff] }
  0xd8   : > { %v609_v16 = vld [vmem:[%s4524_s21 + $0x698] sm:$0xff]  ;;  %v3690_v19 = vpack.c.bf16 %v480_v11, %v416_v10  ;;  %v608_v27 = vld [vmem:[%s4524_s21 + $0x690] sm:$0xff]  ;;  %v419_v29 = vld [vmem:[%s4524_s21 + $0xa8] sm:$0xff] }
  0xd9   : > { %v483_v30 = vld [vmem:[%s4524_s21 + $0x2a8] sm:$0xff]  ;;  %v421_v31 = vld [vmem:[%s4524_s21 + $0xb8] sm:$0xff]  ;;  %v484_v42 = vld [vmem:[%s4524_s21 + $0x2b0] sm:$0xff] }
  0xda   : > { %v485_v32 = vld [vmem:[%s4524_s21 + $0x2b8] sm:$0xff]  ;;  %v387_v34 = vld [vmem:[%s4546_s16 + $0x28] sm:$0xff]  ;;  %v612_v58 = vld [vmem:[%s4524_s21 + $0x6b0] sm:$0xff] }
  0xdb   : > { %3639 = vmatpush1.bf16.xpose.msra.mxu0 %v3638_v5  ;;  %v3680_v5 = vpack.c.bf16 %v479_v63, %v415_v62  ;;  %v3704_v37 = vpack.c.bf16 %v485_v32, %v421_v31  ;;  %v547_v43 = vld [vmem:[%s4524_s21 + $0x4a8] sm:$0xff]  ;;  %v762_v45 = vrot.slane %v387_v34, %v4566_v28  ;;  %v425_v61 = vld [vmem:[%s4524_s21 + $0xd8] sm:$0xff] }
  0xdc   : > { %3647 = vmatpush1.bf16.xpose.msra.mxu1 %v3646_v7  ;;  %3649 = vmatprep.subr.bf16.mxu0 %v3648_v8  ;;  %v738_v7 = vcombine.high %v386_v3, %v386_v3  ;;  %v414_v8 = vld [vmem:[%s4524_s21 + $0x80] sm:$0xff]  ;;  %v611_v44 = vld [vmem:[%s4524_s21 + $0x6a8] sm:$0xff]  ;;  %v489_v62 = vld [vmem:[%s4524_s21 + $0x2d8] sm:$0xff] }
  0xdd   : > { %3657 = vmatprep.subr.bf16.mxu1 %v3656_v9  ;;  %v478_v9 = vld [vmem:[%s4524_s21 + $0x280] sm:$0xff]  ;;  %v423_v59 = vld [vmem:[%s4524_s21 + $0xc8] sm:$0xff]  ;;  %v3720_v3 = vpack.c.bf16 %v489_v62, %v425_v61  ;;  %v389_v31 = vld [vmem:[%s4546_s16 + $0x38] sm:$0xff] }
  0xde   : > { %v3682_v18 = vpack.c.bf16 %v478_v9, %v414_v8  ;;  %v487_v60 = vld [vmem:[%s4524_s21 + $0x2c8] sm:$0xff]  ;;  %v488_v8 = vld [vmem:[%s4524_s21 + $0x2d0] sm:$0xff]  ;;  %v390_v61 = vld [vmem:[%s4546_s16 + $0x40] sm:$0xff] }
  0xdf   : > { %v388_v0 = vld [vmem:[%s4546_s16 + $0x30] sm:$0xff] }
  0xe0   : > { %v551_v9 = vld [vmem:[%s4524_s21 + $0x4c8] sm:$0xff]  ;;  %v779_v11 = vrot.slane %v388_v0, %v4566_v28 }
  0xe1   : > { %v615_v10 = vld [vmem:[%s4524_s21 + $0x6c8] sm:$0xff] }
  0xe2   : > { %1211 = vmatmul.mubr.f32.vlgmr.msra.gmra.mrb[2].mxu0 %v694_v51  ;;  %v735_v51 = vrot.slane %v721_v41, %v4566_v28  ;;  %v420_v41 = vld [vmem:[%s4524_s21 + $0xb0] sm:$0xff] }
  0xe3   : > { %3651 = vmatpush1.bf16.xpose.msra.mxu0 %v3650_v21  ;;  %1281 = vmatmul.mubr.f32.vlgmr.msra.gmra.mrb[2].mxu1 %v701_v54  ;;  %v3668_v54 = vpack.c.bf16 %v603_v47, %v539_v46  ;;  %v3692_v21 = vpack.c.bf16 %v609_v16, %v545_v15  ;;  %v549_v46 = vld [vmem:[%s4524_s21 + $0x4b8] sm:$0xff]  ;;  %v3706_v50 = vpack.c.bf16 %v484_v42, %v420_v41  ;;  %v619_v41 = vld [vmem:[%s4524_s21 + $0x6e8] sm:$0xff] }
  0xe4   : > { %3659 = vmatpush1.bf16.xpose.msra.mxu1 %v3658_v22  ;;  %3653 = vmatprep.subr.bf16.mxu0 %v3652_v23  ;;  %v737_v57 = vcombine.high %v735_v51, %v735_v51  ;;  %v753_v22 = vcombine.high %v745_v14, %v745_v14  ;;  %v613_v47 = vld [vmem:[%s4524_s21 + $0x6b8] sm:$0xff]  ;;  %v796_v42 = vrot.slane %v389_v31, %v4566_v28 }
  0xe5   : > { %3661 = vmatprep.subr.bf16.mxu1 %v3660_v24  ;;  %1350 = vmatprep.mubr.f32.mxu0 %v719_v25  ;;  %v542_v24 = vld [vmem:[%s4524_s21 + $0x480] sm:$0xff] }
  0xe6   : > { %1420 = vmatprep.mubr.f32.mxu1 %v720_v26  ;;  %v606_v25 = vld [vmem:[%s4524_s21 + $0x680] sm:$0xff]  ;;  %v544_v26 = vld [vmem:[%s4524_s21 + $0x490] sm:$0xff] }
  0xe7   : > { %v3686_v33 = vpack.c.bf16 %v606_v25, %v542_v24  ;;  %v3694_v35 = vpack.c.bf16 %v608_v27, %v544_v26  ;;  %v616_v24 = vld [vmem:[%s4524_s21 + $0x6d0] sm:$0xff]  ;;  %v427_v25 = vld [vmem:[%s4524_s21 + $0xe8] sm:$0xff]  ;;  %v429_v27 = vld [vmem:[%s4524_s21 + $0xf8] sm:$0xff] }
  0xe8   : > { %v491_v26 = vld [vmem:[%s4524_s21 + $0x2e8] sm:$0xff] }
  0xeb   : > { %3655 = vmatpush1.bf16.xpose.msra.mxu0 %v3654_v36  ;;  %v3696_v36 = vpack.c.bf16 %v483_v30, %v419_v29  ;;  %v493_v29 = vld [vmem:[%s4524_s21 + $0x2f8] sm:$0xff] }
  0xec   : > { %3663 = vmatpush1.bf16.xpose.msra.mxu1 %v3662_v38  ;;  %3665 = vmatprep.subr.bf16.mxu0 %v3664_v39  ;;  %v755_v38 = vcombine.high %v387_v34, %v387_v34  ;;  %v418_v39 = vld [vmem:[%s4524_s21 + $0xa0] sm:$0xff]  ;;  %v3736_v34 = vpack.c.bf16 %v493_v29, %v429_v27 }
  0xed   : > { %3673 = vmatprep.subr.bf16.mxu1 %v3672_v40  ;;  %v482_v40 = vld [vmem:[%s4524_s21 + $0x2a0] sm:$0xff] }
  0xee   : > { %v3698_v49 = vpack.c.bf16 %v482_v40, %v418_v39  ;;  %v492_v39 = vld [vmem:[%s4524_s21 + $0x2f0] sm:$0xff]  ;;  %v555_v40 = vld [vmem:[%s4524_s21 + $0x4e8] sm:$0xff] }
  0xef   : > { %v391_v27 = vld [vmem:[%s4546_s16 + $0x48] sm:$0xff] }
  0xf2   : > { %1351 = vmatmul.mubr.f32.vlgmr.msra.gmra.mrb[4].mxu0 %v711_v17  ;;  %v752_v17 = vrot.slane %v738_v7, %v4566_v28  ;;  %v424_v7 = vld [vmem:[%s4524_s21 + $0xd0] sm:$0xff] }
  0xf3   : > { %3667 = vmatpush1.bf16.xpose.msra.mxu0 %v3666_v52  ;;  %1421 = vmatmul.mubr.f32.vlgmr.msra.gmra.mrb[4].mxu1 %v718_v20  ;;  %v3684_v20 = vpack.c.bf16 %v607_v13, %v543_v12  ;;  %v3708_v52 = vpack.c.bf16 %v613_v47, %v549_v46  ;;  %v553_v12 = vld [vmem:[%s4524_s21 + $0x4d8] sm:$0xff]  ;;  %v3722_v16 = vpack.c.bf16 %v488_v8, %v424_v7  ;;  %v623_v7 = vld [vmem:[%s4524_s21 + $0x708] sm:$0xff] }
  0xf4   : > { %3675 = vmatpush1.bf16.xpose.msra.mxu1 %v3674_v53  ;;  %3669 = vmatprep.subr.bf16.mxu0 %v3668_v54  ;;  %v754_v23 = vcombine.high %v752_v17, %v752_v17  ;;  %v770_v53 = vcombine.high %v762_v45, %v762_v45  ;;  %v617_v13 = vld [vmem:[%s4524_s21 + $0x6d8] sm:$0xff]  ;;  %v813_v8 = vrot.slane %v390_v61, %v4566_v28 }
  0xf5   : > { %3677 = vmatprep.subr.bf16.mxu1 %v3676_v55  ;;  %1490 = vmatprep.mubr.f32.mxu0 %v736_v56  ;;  %v546_v55 = vld [vmem:[%s4524_s21 + $0x4a0] sm:$0xff] }
  0xf6   : > { %1560 = vmatprep.mubr.f32.mxu1 %v737_v57  ;;  %v610_v56 = vld [vmem:[%s4524_s21 + $0x6a0] sm:$0xff]  ;;  %v548_v57 = vld [vmem:[%s4524_s21 + $0x4b0] sm:$0xff] }
  0xf7   : > { %v3702_v63 = vpack.c.bf16 %v610_v56, %v546_v55  ;;  %v3710_v1 = vpack.c.bf16 %v612_v58, %v548_v57  ;;  %v620_v55 = vld [vmem:[%s4524_s21 + $0x6f0] sm:$0xff]  ;;  %v431_v56 = vld [vmem:[%s4524_s21 + $0x108] sm:$0xff]  ;;  %v433_v58 = vld [vmem:[%s4524_s21 + $0x118] sm:$0xff] }
  0xf8   : > { %v495_v57 = vld [vmem:[%s4524_s21 + $0x308] sm:$0xff] }
  0xfb   : > { %3671 = vmatpush1.bf16.xpose.msra.mxu0 %v3670_v2  ;;  %v3712_v2 = vpack.c.bf16 %v487_v60, %v423_v59  ;;  %v497_v59 = vld [vmem:[%s4524_s21 + $0x318] sm:$0xff] }
  0xfc   : > { %3679 = vmatpush1.bf16.xpose.msra.mxu1 %v3678_v4  ;;  %3681 = vmatprep.subr.bf16.mxu0 %v3680_v5  ;;  %v772_v4 = vcombine.high %v388_v0, %v388_v0  ;;  %v422_v5 = vld [vmem:[%s4524_s21 + $0xc0] sm:$0xff]  ;;  %v3752_v0 = vpack.c.bf16 %v497_v59, %v433_v58  ;;  %v392_v58 = vld [vmem:[%s4546_s16 + $0x50] sm:$0xff] }
  0xfd   : > { %3689 = vmatprep.subr.bf16.mxu1 %v3688_v6  ;;  %v486_v6 = vld [vmem:[%s4524_s21 + $0x2c0] sm:$0xff] }
  0xfe   : > { %v3714_v15 = vpack.c.bf16 %v486_v6, %v422_v5  ;;  %v496_v5 = vld [vmem:[%s4524_s21 + $0x310] sm:$0xff]  ;;  %v559_v6 = vld [vmem:[%s4524_s21 + $0x508] sm:$0xff] }
 0x102   : > { %1491 = vmatmul.mubr.f32.vlgmr.msra.gmra.mrb[6].mxu0 %v728_v48  ;;  %v769_v48 = vrot.slane %v755_v38, %v4566_v28  ;;  %v428_v38 = vld [vmem:[%s4524_s21 + $0xf0] sm:$0xff] }
 0x103   : > { %3683 = vmatpush1.bf16.xpose.msra.mxu0 %v3682_v18  ;;  %1561 = vmatmul.mubr.f32.vlgmr.msra.gmra.mrb[6].mxu1 %v735_v51  ;;  %v3700_v51 = vpack.c.bf16 %v611_v44, %v547_v43  ;;  %v3724_v18 = vpack.c.bf16 %v617_v13, %v553_v12  ;;  %v557_v43 = vld [vmem:[%s4524_s21 + $0x4f8] sm:$0xff]  ;;  %v3738_v47 = vpack.c.bf16 %v492_v39, %v428_v38  ;;  %v627_v38 = vld [vmem:[%s4524_s21 + $0x728] sm:$0xff] }
 0x104   : > { %3691 = vmatpush1.bf16.xpose.msra.mxu1 %v3690_v19  ;;  %3685 = vmatprep.subr.bf16.mxu0 %v3684_v20  ;;  %v771_v54 = vcombine.high %v769_v48, %v769_v48  ;;  %v787_v19 = vcombine.high %v779_v11, %v779_v11  ;;  %v621_v44 = vld [vmem:[%s4524_s21 + $0x6f8] sm:$0xff]  ;;  %v830_v39 = vrot.slane %v391_v27, %v4566_v28 }
 0x105   : > { %3693 = vmatprep.subr.bf16.mxu1 %v3692_v21  ;;  %1630 = vmatprep.mubr.f32.mxu0 %v753_v22  ;;  %v550_v21 = vld [vmem:[%s4524_s21 + $0x4c0] sm:$0xff] }
 0x106   : > { %1700 = vmatprep.mubr.f32.mxu1 %v754_v23  ;;  %v614_v22 = vld [vmem:[%s4524_s21 + $0x6c0] sm:$0xff]  ;;  %v552_v23 = vld [vmem:[%s4524_s21 + $0x4d0] sm:$0xff] }
 0x107   : > { %v3718_v30 = vpack.c.bf16 %v614_v22, %v550_v21  ;;  %v3726_v32 = vpack.c.bf16 %v616_v24, %v552_v23  ;;  %v624_v21 = vld [vmem:[%s4524_s21 + $0x710] sm:$0xff]  ;;  %v435_v22 = vld [vmem:[%s4524_s21 + $0x128] sm:$0xff]  ;;  %v437_v24 = vld [vmem:[%s4524_s21 + $0x138] sm:$0xff] }
 0x108   : > { %v499_v23 = vld [vmem:[%s4524_s21 + $0x328] sm:$0xff] }
 0x10b   : > { %3687 = vmatpush1.bf16.xpose.msra.mxu0 %v3686_v33  ;;  %v3728_v33 = vpack.c.bf16 %v491_v26, %v427_v25  ;;  %v501_v25 = vld [vmem:[%s4524_s21 + $0x338] sm:$0xff] }
 0x10c   : > { %3695 = vmatpush1.bf16.xpose.msra.mxu1 %v3694_v35  ;;  %3697 = vmatprep.subr.bf16.mxu0 %v3696_v36  ;;  %v789_v35 = vcombine.high %v389_v31, %v389_v31  ;;  %v426_v36 = vld [vmem:[%s4524_s21 + $0xe0] sm:$0xff]  ;;  %v3768_v31 = vpack.c.bf16 %v501_v25, %v437_v24  ;;  %v393_v24 = vld [vmem:[%s4546_s16 + $0x58] sm:$0xff] }
 0x10d   : > { %3705 = vmatprep.subr.bf16.mxu1 %v3704_v37  ;;  %v490_v37 = vld [vmem:[%s4524_s21 + $0x2e0] sm:$0xff] }
 0x10e   : > { %v3730_v46 = vpack.c.bf16 %v490_v37, %v426_v36  ;;  %v500_v36 = vld [vmem:[%s4524_s21 + $0x330] sm:$0xff]  ;;  %v563_v37 = vld [vmem:[%s4524_s21 + $0x528] sm:$0xff] }
 0x112   : > { %1631 = vmatmul.mubr.f32.vlgmr.msra.gmra.mrb[8].mxu0 %v745_v14  ;;  %v786_v14 = vrot.slane %v772_v4, %v4566_v28  ;;  %v432_v4 = vld [vmem:[%s4524_s21 + $0x110] sm:$0xff] }
 0x113   : > { %3699 = vmatpush1.bf16.xpose.msra.mxu0 %v3698_v49  ;;  %1701 = vmatmul.mubr.f32.vlgmr.msra.gmra.mrb[8].mxu1 %v752_v17  ;;  %v3716_v17 = vpack.c.bf16 %v615_v10, %v551_v9  ;;  %v3740_v49 = vpack.c.bf16 %v621_v44, %v557_v43  ;;  %v561_v9 = vld [vmem:[%s4524_s21 + $0x518] sm:$0xff]  ;;  %v3754_v13 = vpack.c.bf16 %v496_v5, %v432_v4  ;;  %v631_v4 = vld [vmem:[%s4524_s21 + $0x748] sm:$0xff] }
 0x114   : > { %3707 = vmatpush1.bf16.xpose.msra.mxu1 %v3706_v50  ;;  %3701 = vmatprep.subr.bf16.mxu0 %v3700_v51  ;;  %v788_v20 = vcombine.high %v786_v14, %v786_v14  ;;  %v804_v50 = vcombine.high %v796_v42, %v796_v42  ;;  %v625_v10 = vld [vmem:[%s4524_s21 + $0x718] sm:$0xff]  ;;  %v847_v5 = vrot.slane %v392_v58, %v4566_v28 }
 0x115   : > { %3709 = vmatprep.subr.bf16.mxu1 %v3708_v52  ;;  %1770 = vmatprep.mubr.f32.mxu0 %v770_v53  ;;  %v554_v52 = vld [vmem:[%s4524_s21 + $0x4e0] sm:$0xff] }
 0x116   : > { %1840 = vmatprep.mubr.f32.mxu1 %v771_v54  ;;  %v618_v53 = vld [vmem:[%s4524_s21 + $0x6e0] sm:$0xff]  ;;  %v556_v54 = vld [vmem:[%s4524_s21 + $0x4f0] sm:$0xff] }
 0x117   : > { %v3734_v60 = vpack.c.bf16 %v618_v53, %v554_v52  ;;  %v3742_v62 = vpack.c.bf16 %v620_v55, %v556_v54  ;;  %v628_v52 = vld [vmem:[%s4524_s21 + $0x730] sm:$0xff]  ;;  %v439_v53 = vld [vmem:[%s4524_s21 + $0x148] sm:$0xff]  ;;  %v441_v55 = vld [vmem:[%s4524_s21 + $0x158] sm:$0xff] }
 0x118   : > { %v503_v54 = vld [vmem:[%s4524_s21 + $0x348] sm:$0xff] }
 0x11b   : > { %3703 = vmatpush1.bf16.xpose.msra.mxu0 %v3702_v63  ;;  %v3744_v63 = vpack.c.bf16 %v495_v57, %v431_v56  ;;  %v505_v56 = vld [vmem:[%s4524_s21 + $0x358] sm:$0xff] }
 0x11c   : > { %3711 = vmatpush1.bf16.xpose.msra.mxu1 %v3710_v1  ;;  %3713 = vmatprep.subr.bf16.mxu0 %v3712_v2  ;;  %v806_v1 = vcombine.high %v390_v61, %v390_v61  ;;  %v430_v2 = vld [vmem:[%s4524_s21 + $0x100] sm:$0xff]  ;;  %v3784_v61 = vpack.c.bf16 %v505_v56, %v441_v55 }
 0x11d   : > { %3721 = vmatprep.subr.bf16.mxu1 %v3720_v3  ;;  %v494_v3 = vld [vmem:[%s4524_s21 + $0x300] sm:$0xff] }
 0x11e   : > { %v3746_v12 = vpack.c.bf16 %v494_v3, %v430_v2  ;;  %v504_v2 = vld [vmem:[%s4524_s21 + $0x350] sm:$0xff]  ;;  %v567_v3 = vld [vmem:[%s4524_s21 + $0x548] sm:$0xff]  ;;  %v394_v55 = vld [vmem:[%s4546_s16 + $0x60] sm:$0xff] }
 0x122   : > { %1771 = vmatmul.mubr.f32.vlgmr.msra.gmra.mrb[10].mxu0 %v762_v45  ;;  %v803_v45 = vrot.slane %v789_v35, %v4566_v28  ;;  %v436_v35 = vld [vmem:[%s4524_s21 + $0x130] sm:$0xff] }
 0x123   : > { %3715 = vmatpush1.bf16.xpose.msra.mxu0 %v3714_v15  ;;  %1841 = vmatmul.mubr.f32.vlgmr.msra.gmra.mrb[10].mxu1 %v769_v48  ;;  %v3732_v48 = vpack.c.bf16 %v619_v41, %v555_v40  ;;  %v3756_v15 = vpack.c.bf16 %v625_v10, %v561_v9  ;;  %v565_v40 = vld [vmem:[%s4524_s21 + $0x538] sm:$0xff]  ;;  %v3770_v44 = vpack.c.bf16 %v500_v36, %v436_v35  ;;  %v635_v35 = vld [vmem:[%s4524_s21 + $0x768] sm:$0xff] }
 0x124   : > { %3723 = vmatpush1.bf16.xpose.msra.mxu1 %v3722_v16  ;;  %3717 = vmatprep.subr.bf16.mxu0 %v3716_v17  ;;  %v805_v51 = vcombine.high %v803_v45, %v803_v45  ;;  %v821_v16 = vcombine.high %v813_v8, %v813_v8  ;;  %v629_v41 = vld [vmem:[%s4524_s21 + $0x738] sm:$0xff]  ;;  %v864_v36 = vrot.slane %v393_v24, %v4566_v28 }
 0x125   : > { %3725 = vmatprep.subr.bf16.mxu1 %v3724_v18  ;;  %1910 = vmatprep.mubr.f32.mxu0 %v787_v19  ;;  %v558_v18 = vld [vmem:[%s4524_s21 + $0x500] sm:$0xff] }
 0x126   : > { %1980 = vmatprep.mubr.f32.mxu1 %v788_v20  ;;  %v622_v19 = vld [vmem:[%s4524_s21 + $0x700] sm:$0xff]  ;;  %v560_v20 = vld [vmem:[%s4524_s21 + $0x510] sm:$0xff] }
 0x127   : > { %v3750_v26 = vpack.c.bf16 %v622_v19, %v558_v18  ;;  %v3758_v29 = vpack.c.bf16 %v624_v21, %v560_v20  ;;  %v632_v18 = vld [vmem:[%s4524_s21 + $0x750] sm:$0xff]  ;;  %v443_v19 = vld [vmem:[%s4524_s21 + $0x168] sm:$0xff]  ;;  %v445_v21 = vld [vmem:[%s4524_s21 + $0x178] sm:$0xff] }
 0x128   : > { %v507_v20 = vld [vmem:[%s4524_s21 + $0x368] sm:$0xff] }
 0x12b   : > { %3719 = vmatpush1.bf16.xpose.msra.mxu0 %v3718_v30  ;;  %v3760_v30 = vpack.c.bf16 %v499_v23, %v435_v22  ;;  %v509_v22 = vld [vmem:[%s4524_s21 + $0x378] sm:$0xff] }
 0x12c   : > { %3727 = vmatpush1.bf16.xpose.msra.mxu1 %v3726_v32  ;;  %3729 = vmatprep.subr.bf16.mxu0 %v3728_v33  ;;  %v823_v32 = vcombine.high %v391_v27, %v391_v27  ;;  %v434_v33 = vld [vmem:[%s4524_s21 + $0x120] sm:$0xff]  ;;  %v3800_v27 = vpack.c.bf16 %v509_v22, %v445_v21 }
 0x12d   : > { %3737 = vmatprep.subr.bf16.mxu1 %v3736_v34  ;;  %v498_v34 = vld [vmem:[%s4524_s21 + $0x320] sm:$0xff] }
 0x12e   : > { %v3762_v43 = vpack.c.bf16 %v498_v34, %v434_v33  ;;  %v508_v33 = vld [vmem:[%s4524_s21 + $0x370] sm:$0xff]  ;;  %v571_v34 = vld [vmem:[%s4524_s21 + $0x568] sm:$0xff] }
 0x12f   : > { %v395_v21 = vld [vmem:[%s4546_s16 + $0x68] sm:$0xff] }
 0x132   : > { %1911 = vmatmul.mubr.f32.vlgmr.msra.gmra.mrb[12].mxu0 %v779_v11  ;;  %v820_v11 = vrot.slane %v806_v1, %v4566_v28  ;;  %v440_v1 = vld [vmem:[%s4524_s21 + $0x150] sm:$0xff] }
 0x133   : > { %3731 = vmatpush1.bf16.xpose.msra.mxu0 %v3730_v46  ;;  %1981 = vmatmul.mubr.f32.vlgmr.msra.gmra.mrb[12].mxu1 %v786_v14  ;;  %v3748_v14 = vpack.c.bf16 %v623_v7, %v559_v6  ;;  %v3772_v46 = vpack.c.bf16 %v629_v41, %v565_v40  ;;  %v569_v6 = vld [vmem:[%s4524_s21 + $0x558] sm:$0xff]  ;;  %v3786_v10 = vpack.c.bf16 %v504_v2, %v440_v1  ;;  %v639_v1 = vld [vmem:[%s4524_s21 + $0x788] sm:$0xff] }
 0x134   : > { %3739 = vmatpush1.bf16.xpose.msra.mxu1 %v3738_v47  ;;  %3733 = vmatprep.subr.bf16.mxu0 %v3732_v48  ;;  %v822_v17 = vcombine.high %v820_v11, %v820_v11  ;;  %v838_v47 = vcombine.high %v830_v39, %v830_v39  ;;  %v633_v7 = vld [vmem:[%s4524_s21 + $0x758] sm:$0xff]  ;;  %v881_v2 = vrot.slane %v394_v55, %v4566_v28 }
 0x135   : > { %3741 = vmatprep.subr.bf16.mxu1 %v3740_v49  ;;  %2050 = vmatprep.mubr.f32.mxu0 %v804_v50  ;;  %v562_v49 = vld [vmem:[%s4524_s21 + $0x520] sm:$0xff] }
 0x136   : > { %2120 = vmatprep.mubr.f32.mxu1 %v805_v51  ;;  %v626_v50 = vld [vmem:[%s4524_s21 + $0x720] sm:$0xff]  ;;  %v564_v51 = vld [vmem:[%s4524_s21 + $0x530] sm:$0xff] }
 0x137   : > { %v3766_v57 = vpack.c.bf16 %v626_v50, %v562_v49  ;;  %v3774_v59 = vpack.c.bf16 %v628_v52, %v564_v51  ;;  %v636_v49 = vld [vmem:[%s4524_s21 + $0x770] sm:$0xff]  ;;  %v447_v50 = vld [vmem:[%s4524_s21 + $0x188] sm:$0xff]  ;;  %v449_v52 = vld [vmem:[%s4524_s21 + $0x198] sm:$0xff] }
 0x138   : > { %v511_v51 = vld [vmem:[%s4524_s21 + $0x388] sm:$0xff] }
 0x13b   : > { %3735 = vmatpush1.bf16.xpose.msra.mxu0 %v3734_v60  ;;  %v3776_v60 = vpack.c.bf16 %v503_v54, %v439_v53  ;;  %v513_v53 = vld [vmem:[%s4524_s21 + $0x398] sm:$0xff] }
 0x13c   : > { %3743 = vmatpush1.bf16.xpose.msra.mxu1 %v3742_v62  ;;  %3745 = vmatprep.subr.bf16.mxu0 %v3744_v63  ;;  %v840_v62 = vcombine.high %v392_v58, %v392_v58  ;;  %v438_v63 = vld [vmem:[%s4524_s21 + $0x140] sm:$0xff]  ;;  %v3816_v58 = vpack.c.bf16 %v513_v53, %v449_v52  ;;  %v396_v52 = vld [vmem:[%s4546_s16 + $0x70] sm:$0xff] }
 0x13d   : > { %3753 = vmatprep.subr.bf16.mxu1 %v3752_v0  ;;  %v502_v0 = vld [vmem:[%s4524_s21 + $0x340] sm:$0xff] }
 0x13e   : > { %v3778_v9 = vpack.c.bf16 %v502_v0, %v438_v63  ;;  %v512_v63 = vld [vmem:[%s4524_s21 + $0x390] sm:$0xff]  ;;  %v575_v0 = vld [vmem:[%s4524_s21 + $0x588] sm:$0xff] }
 0x142   : > { %2051 = vmatmul.mubr.f32.vlgmr.msra.gmra.mrb[14].mxu0 %v796_v42  ;;  %v837_v42 = vrot.slane %v823_v32, %v4566_v28  ;;  %v444_v32 = vld [vmem:[%s4524_s21 + $0x170] sm:$0xff] }
 0x143   : > { %3747 = vmatpush1.bf16.xpose.msra.mxu0 %v3746_v12  ;;  %2121 = vmatmul.mubr.f32.vlgmr.msra.gmra.mrb[14].mxu1 %v803_v45  ;;  %v3764_v45 = vpack.c.bf16 %v627_v38, %v563_v37  ;;  %v3788_v12 = vpack.c.bf16 %v633_v7, %v569_v6  ;;  %v573_v37 = vld [vmem:[%s4524_s21 + $0x578] sm:$0xff]  ;;  %v3802_v41 = vpack.c.bf16 %v508_v33, %v444_v32  ;;  %v643_v32 = vld [vmem:[%s4524_s21 + $0x7a8] sm:$0xff] }
 0x144   : > { %3755 = vmatpush1.bf16.xpose.msra.mxu1 %v3754_v13  ;;  %3749 = vmatprep.subr.bf16.mxu0 %v3748_v14  ;;  %v839_v48 = vcombine.high %v837_v42, %v837_v42  ;;  %v855_v13 = vcombine.high %v847_v5, %v847_v5  ;;  %v637_v38 = vld [vmem:[%s4524_s21 + $0x778] sm:$0xff]  ;;  %v898_v33 = vrot.slane %v395_v21, %v4566_v28 }
 0x145   : > { %3757 = vmatprep.subr.bf16.mxu1 %v3756_v15  ;;  %2190 = vmatprep.mubr.f32.mxu0 %v821_v16  ;;  %v566_v15 = vld [vmem:[%s4524_s21 + $0x540] sm:$0xff] }
 0x146   : > { %2260 = vmatprep.mubr.f32.mxu1 %v822_v17  ;;  %v630_v16 = vld [vmem:[%s4524_s21 + $0x740] sm:$0xff]  ;;  %v568_v17 = vld [vmem:[%s4524_s21 + $0x550] sm:$0xff] }
 0x147   : > { %v3782_v23 = vpack.c.bf16 %v630_v16, %v566_v15  ;;  %v3790_v25 = vpack.c.bf16 %v632_v18, %v568_v17  ;;  %v640_v15 = vld [vmem:[%s4524_s21 + $0x790] sm:$0xff]  ;;  %v451_v16 = vld [vmem:[%s4524_s21 + $0x1a8] sm:$0xff]  ;;  %v453_v18 = vld [vmem:[%s4524_s21 + $0x1b8] sm:$0xff] }
 0x148   : > { %v515_v17 = vld [vmem:[%s4524_s21 + $0x3a8] sm:$0xff] }
 0x14b   : > { %3751 = vmatpush1.bf16.xpose.msra.mxu0 %v3750_v26  ;;  %v3792_v26 = vpack.c.bf16 %v507_v20, %v443_v19  ;;  %v517_v19 = vld [vmem:[%s4524_s21 + $0x3b8] sm:$0xff] }
 0x14c   : > { %3759 = vmatpush1.bf16.xpose.msra.mxu1 %v3758_v29  ;;  %3761 = vmatprep.subr.bf16.mxu0 %v3760_v30  ;;  %v857_v29 = vcombine.high %v393_v24, %v393_v24  ;;  %v442_v30 = vld [vmem:[%s4524_s21 + $0x160] sm:$0xff]  ;;  %v3832_v24 = vpack.c.bf16 %v517_v19, %v453_v18  ;;  %v461_v18 = vld [vmem:[%s4524_s21 + $0x1f8] sm:$0xff] }
 0x14d   : > { %3769 = vmatprep.subr.bf16.mxu1 %v3768_v31  ;;  %v506_v31 = vld [vmem:[%s4524_s21 + $0x360] sm:$0xff]  ;;  %v525_v19 = vld [vmem:[%s4524_s21 + $0x3f8] sm:$0xff] }
 0x14e   : > { %v3794_v40 = vpack.c.bf16 %v506_v31, %v442_v30  ;;  %v516_v30 = vld [vmem:[%s4524_s21 + $0x3b0] sm:$0xff]  ;;  %v579_v31 = vld [vmem:[%s4524_s21 + $0x5a8] sm:$0xff] }
 0x152   : > { %2191 = vmatmul.mubr.f32.vlgmr.msra.gmra.mrb[16].mxu0 %v813_v8  ;;  %v854_v8 = vrot.slane %v840_v62, %v4566_v28  ;;  %v448_v62 = vld [vmem:[%s4524_s21 + $0x190] sm:$0xff] }
 0x153   : > { %3763 = vmatpush1.bf16.xpose.msra.mxu0 %v3762_v43  ;;  %2261 = vmatmul.mubr.f32.vlgmr.msra.gmra.mrb[16].mxu1 %v820_v11  ;;  %v3780_v11 = vpack.c.bf16 %v631_v4, %v567_v3  ;;  %v3804_v43 = vpack.c.bf16 %v637_v38, %v573_v37  ;;  %v577_v3 = vld [vmem:[%s4524_s21 + $0x598] sm:$0xff]  ;;  %v3818_v7 = vpack.c.bf16 %v512_v63, %v448_v62  ;;  %v647_v62 = vld [vmem:[%s4524_s21 + $0x7c8] sm:$0xff] }
 0x154   : > { %3771 = vmatpush1.bf16.xpose.msra.mxu1 %v3770_v44  ;;  %3765 = vmatprep.subr.bf16.mxu0 %v3764_v45  ;;  %v856_v14 = vcombine.high %v854_v8, %v854_v8  ;;  %v872_v44 = vcombine.high %v864_v36, %v864_v36  ;;  %v641_v4 = vld [vmem:[%s4524_s21 + $0x798] sm:$0xff]  ;;  %v915_v63 = vrot.slane %v396_v52, %v4566_v28 }
 0x155   : > { %3773 = vmatprep.subr.bf16.mxu1 %v3772_v46  ;;  %2330 = vmatprep.mubr.f32.mxu0 %v838_v47  ;;  %v570_v46 = vld [vmem:[%s4524_s21 + $0x560] sm:$0xff] }
 0x156   : > { %2400 = vmatprep.mubr.f32.mxu1 %v839_v48  ;;  %v634_v47 = vld [vmem:[%s4524_s21 + $0x760] sm:$0xff]  ;;  %v572_v48 = vld [vmem:[%s4524_s21 + $0x570] sm:$0xff] }
 0x157   : > { %v3798_v54 = vpack.c.bf16 %v634_v47, %v570_v46  ;;  %v3806_v56 = vpack.c.bf16 %v636_v49, %v572_v48  ;;  %v644_v46 = vld [vmem:[%s4524_s21 + $0x7b0] sm:$0xff]  ;;  %v455_v47 = vld [vmem:[%s4524_s21 + $0x1c8] sm:$0xff]  ;;  %v457_v49 = vld [vmem:[%s4524_s21 + $0x1d8] sm:$0xff] }
 0x158   : > { %v519_v48 = vld [vmem:[%s4524_s21 + $0x3c8] sm:$0xff] }
 0x15b   : > { %3767 = vmatpush1.bf16.xpose.msra.mxu0 %v3766_v57  ;;  %v3808_v57 = vpack.c.bf16 %v511_v51, %v447_v50  ;;  %v521_v50 = vld [vmem:[%s4524_s21 + $0x3d8] sm:$0xff] }
 0x15c   : > { %3775 = vmatpush1.bf16.xpose.msra.mxu1 %v3774_v59  ;;  %3777 = vmatprep.subr.bf16.mxu0 %v3776_v60  ;;  %v874_v59 = vcombine.high %v394_v55, %v394_v55  ;;  %v446_v60 = vld [vmem:[%s4524_s21 + $0x180] sm:$0xff]  ;;  %v3848_v55 = vpack.c.bf16 %v521_v50, %v457_v49  ;;  %v652_v49 = vld [vmem:[%s4524_s21 + $0x7f0] sm:$0xff] }
 0x15d   : > { %3785 = vmatprep.subr.bf16.mxu1 %v3784_v61  ;;  %v510_v61 = vld [vmem:[%s4524_s21 + $0x380] sm:$0xff] }
 0x15e   : > { %v3810_v6 = vpack.c.bf16 %v510_v61, %v446_v60  ;;  %v520_v60 = vld [vmem:[%s4524_s21 + $0x3d0] sm:$0xff]  ;;  %v583_v61 = vld [vmem:[%s4524_s21 + $0x5c8] sm:$0xff] }
 0x162   : > { %2331 = vmatmul.mubr.f32.vlgmr.msra.gmra.mrb[18].mxu0 %v830_v39  ;;  %v871_v39 = vrot.slane %v857_v29, %v4566_v28  ;;  %v452_v29 = vld [vmem:[%s4524_s21 + $0x1b0] sm:$0xff] }
 0x163   : > { %3779 = vmatpush1.bf16.xpose.msra.mxu0 %v3778_v9  ;;  %2401 = vmatmul.mubr.f32.vlgmr.msra.gmra.mrb[18].mxu1 %v837_v42  ;;  %v3796_v42 = vpack.c.bf16 %v635_v35, %v571_v34  ;;  %v3820_v9 = vpack.c.bf16 %v641_v4, %v577_v3  ;;  %v581_v34 = vld [vmem:[%s4524_s21 + $0x5b8] sm:$0xff]  ;;  %v3834_v38 = vpack.c.bf16 %v516_v30, %v452_v29  ;;  %v458_v29 = vld [vmem:[%s4524_s21 + $0x1e0] sm:$0xff] }
 0x164   : > { %3787 = vmatpush1.bf16.xpose.msra.mxu1 %v3786_v10  ;;  %3781 = vmatprep.subr.bf16.mxu0 %v3780_v11  ;;  %v873_v45 = vcombine.high %v871_v39, %v871_v39  ;;  %v889_v10 = vcombine.high %v881_v2, %v881_v2  ;;  %v645_v35 = vld [vmem:[%s4524_s21 + $0x7b8] sm:$0xff]  ;;  %v522_v30 = vld [vmem:[%s4524_s21 + $0x3e0] sm:$0xff] }
 0x165   : > { %3789 = vmatprep.subr.bf16.mxu1 %v3788_v12  ;;  %2470 = vmatprep.mubr.f32.mxu0 %v855_v13  ;;  %v574_v12 = vld [vmem:[%s4524_s21 + $0x580] sm:$0xff] }
 0x166   : > { %2540 = vmatprep.mubr.f32.mxu1 %v856_v14  ;;  %v638_v13 = vld [vmem:[%s4524_s21 + $0x780] sm:$0xff]  ;;  %v576_v14 = vld [vmem:[%s4524_s21 + $0x590] sm:$0xff] }
 0x167   : > { %v3814_v20 = vpack.c.bf16 %v638_v13, %v574_v12  ;;  %v3822_v22 = vpack.c.bf16 %v640_v15, %v576_v14  ;;  %v648_v13 = vld [vmem:[%s4524_s21 + $0x7d0] sm:$0xff]  ;;  %v459_v14 = vld [vmem:[%s4524_s21 + $0x1e8] sm:$0xff] }
 0x168   : > { %v523_v15 = vld [vmem:[%s4524_s21 + $0x3e8] sm:$0xff] }
 0x16b   : > { %3783 = vmatpush1.bf16.xpose.msra.mxu0 %v3782_v23  ;;  %v3824_v23 = vpack.c.bf16 %v515_v17, %v451_v16 }
 0x16c   : > { %3791 = vmatpush1.bf16.xpose.msra.mxu1 %v3790_v25  ;;  %3793 = vmatprep.subr.bf16.mxu0 %v3792_v26  ;;  %v891_v25 = vcombine.high %v395_v21, %v395_v21  ;;  %v450_v26 = vld [vmem:[%s4524_s21 + $0x1a0] sm:$0xff] }
 0x16d   : > { %3801 = vmatprep.subr.bf16.mxu1 %v3800_v27  ;;  %v514_v27 = vld [vmem:[%s4524_s21 + $0x3a0] sm:$0xff] }
 0x16e   : > { %v3826_v37 = vpack.c.bf16 %v514_v27, %v450_v26  ;;  %v3864_v26 = vpack.c.bf16 %v525_v19, %v461_v18 }
 0x172   : > { %2471 = vmatmul.mubr.f32.vlgmr.msra.gmra.mrb[20].mxu0 %v847_v5  ;;  %v888_v5 = vrot.slane %v874_v59, %v4566_v28  ;;  %v456_v59 = vld [vmem:[%s4524_s21 + $0x1d0] sm:$0xff] }
 0x173   : > { %3795 = vmatpush1.bf16.xpose.msra.mxu0 %v3794_v40  ;;  %2541 = vmatmul.mubr.f32.vlgmr.msra.gmra.mrb[20].mxu1 %v854_v8  ;;  %v3812_v8 = vpack.c.bf16 %v639_v1, %v575_v0  ;;  %v3836_v40 = vpack.c.bf16 %v645_v35, %v581_v34  ;;  %v585_v0 = vld [vmem:[%s4524_s21 + $0x5d8] sm:$0xff]  ;;  %v3850_v4 = vpack.c.bf16 %v520_v60, %v456_v59  ;;  %v651_v34 = vld [vmem:[%s4524_s21 + $0x7e8] sm:$0xff] }
 0x174   : > { %3803 = vmatpush1.bf16.xpose.msra.mxu1 %v3802_v41  ;;  %3797 = vmatprep.subr.bf16.mxu0 %v3796_v42  ;;  %v890_v11 = vcombine.high %v888_v5, %v888_v5  ;;  %v906_v41 = vcombine.high %v898_v33, %v898_v33  ;;  %v649_v1 = vld [vmem:[%s4524_s21 + $0x7d8] sm:$0xff] }
 0x175   : > { %3805 = vmatprep.subr.bf16.mxu1 %v3804_v43  ;;  %2610 = vmatprep.mubr.f32.mxu0 %v872_v44  ;;  %v578_v43 = vld [vmem:[%s4524_s21 + $0x5a0] sm:$0xff] }
 0x176   : > { %2680 = vmatprep.mubr.f32.mxu1 %v873_v45  ;;  %v642_v44 = vld [vmem:[%s4524_s21 + $0x7a0] sm:$0xff]  ;;  %v580_v45 = vld [vmem:[%s4524_s21 + $0x5b0] sm:$0xff] }
 0x177   : > { %v3830_v51 = vpack.c.bf16 %v642_v44, %v578_v43  ;;  %v3838_v53 = vpack.c.bf16 %v644_v46, %v580_v45  ;;  %v586_v45 = vld [vmem:[%s4524_s21 + $0x5e0] sm:$0xff] }
 0x178   : > { %v650_v46 = vld [vmem:[%s4524_s21 + $0x7e0] sm:$0xff] }
 0x17b   : > { %3799 = vmatpush1.bf16.xpose.msra.mxu0 %v3798_v54  ;;  %v3840_v54 = vpack.c.bf16 %v519_v48, %v455_v47  ;;  %v588_v48 = vld [vmem:[%s4524_s21 + $0x5f0] sm:$0xff] }
 0x17c   : > { %3807 = vmatpush1.bf16.xpose.msra.mxu1 %v3806_v56  ;;  %3809 = vmatprep.subr.bf16.mxu0 %v3808_v57  ;;  %v908_v56 = vcombine.high %v396_v52, %v396_v52  ;;  %v454_v57 = vld [vmem:[%s4524_s21 + $0x1c0] sm:$0xff] }
 0x17d   : > { %3817 = vmatprep.subr.bf16.mxu1 %v3816_v58  ;;  %v518_v58 = vld [vmem:[%s4524_s21 + $0x3c0] sm:$0xff] }
 0x17e   : > { %v3842_v3 = vpack.c.bf16 %v518_v58, %v454_v57 }
 0x182   : > { %2611 = vmatmul.mubr.f32.vlgmr.msra.gmra.mrb[22].mxu0 %v864_v36  ;;  %v905_v36 = vrot.slane %v891_v25, %v4566_v28  ;;  %v3856_v25 = vpack.c.bf16 %v523_v15, %v459_v14 }
 0x183   : > { %3811 = vmatpush1.bf16.xpose.msra.mxu0 %v3810_v6  ;;  %2681 = vmatmul.mubr.f32.vlgmr.msra.gmra.mrb[22].mxu1 %v871_v39  ;;  %v3828_v39 = vpack.c.bf16 %v643_v32, %v579_v31  ;;  %v3852_v6 = vpack.c.bf16 %v649_v1, %v585_v0  ;;  %v460_v31 = vld [vmem:[%s4524_s21 + $0x1f0] sm:$0xff] }
 0x184   : > { %3819 = vmatpush1.bf16.xpose.msra.mxu1 %v3818_v7  ;;  %3813 = vmatprep.subr.bf16.mxu0 %v3812_v8  ;;  %v907_v42 = vcombine.high %v905_v36, %v905_v36  ;;  %v923_v7 = vcombine.high %v915_v63, %v915_v63  ;;  %v524_v32 = vld [vmem:[%s4524_s21 + $0x3f0] sm:$0xff] }
 0x185   : > { %3821 = vmatprep.subr.bf16.mxu1 %v3820_v9  ;;  %2750 = vmatprep.mubr.f32.mxu0 %v889_v10  ;;  %v582_v9 = vld [vmem:[%s4524_s21 + $0x5c0] sm:$0xff] }
 0x186   : > { %2820 = vmatprep.mubr.f32.mxu1 %v890_v11  ;;  %v646_v10 = vld [vmem:[%s4524_s21 + $0x7c0] sm:$0xff]  ;;  %v584_v11 = vld [vmem:[%s4524_s21 + $0x5d0] sm:$0xff] }
 0x18b   : > { %3815 = vmatpush1.bf16.xpose.msra.mxu0 %v3814_v20 }
 0x18c   : > { %3823 = vmatpush1.bf16.xpose.msra.mxu1 %v3822_v22  ;;  %3825 = vmatprep.subr.bf16.mxu0 %v3824_v23  ;;  %v3846_v22 = vpack.c.bf16 %v646_v10, %v582_v9  ;;  %v397_v23 = vld [vmem:[%s4546_s16 + $0x78] sm:$0xff] }
 0x18d   : > { %3833 = vmatprep.subr.bf16.mxu1 %v3832_v24  ;;  %v3854_v24 = vpack.c.bf16 %v648_v13, %v584_v11  ;;  %v925_v27 = vcombine.high %v397_v23, %v397_v23  ;;  %v932_v35 = vrot.slane %v397_v23, %v4566_v28 }
 0x18f   : > { %v940_v43 = vcombine.high %v932_v35, %v932_v35 }
 0x192   : > { %2751 = vmatmul.mubr.f32.vlgmr.msra.gmra.mrb[24].mxu0 %v881_v2  ;;  %v922_v2 = vrot.slane %v908_v56, %v4566_v28 }
 0x193   : > { %3827 = vmatpush1.bf16.xpose.msra.mxu0 %v3826_v37  ;;  %2821 = vmatmul.mubr.f32.vlgmr.msra.gmra.mrb[24].mxu1 %v888_v5  ;;  %v3844_v5 = vpack.c.bf16 %v647_v62, %v583_v61  ;;  %v653_v37 = vld [vmem:[%s4524_s21 + $0x7f8] sm:$0xff] }
 0x194   : > { %3835 = vmatpush1.bf16.xpose.msra.mxu1 %v3834_v38  ;;  %3829 = vmatprep.subr.bf16.mxu0 %v3828_v39  ;;  %v924_v8 = vcombine.high %v922_v2, %v922_v2  ;;  %v939_v38 = vrot.slane %v925_v27, %v4566_v28  ;;  %v3858_v39 = vpack.c.bf16 %v522_v30, %v458_v29 }
 0x195   : > { %3837 = vmatprep.subr.bf16.mxu1 %v3836_v40  ;;  %2890 = vmatprep.mubr.f32.mxu0 %v906_v41  ;;  %v3866_v40 = vpack.c.bf16 %v524_v32, %v460_v31 }
 0x196   : > { %2960 = vmatprep.mubr.f32.mxu1 %v907_v42  ;;  %v941_v44 = vcombine.high %v939_v38, %v939_v38 }
 0x19b   : > { %3831 = vmatpush1.bf16.xpose.msra.mxu0 %v3830_v51 }
 0x19c   : > { %3839 = vmatpush1.bf16.xpose.msra.mxu1 %v3838_v53  ;;  %3841 = vmatprep.subr.bf16.mxu0 %v3840_v54  ;;  %v3862_v53 = vpack.c.bf16 %v650_v46, %v586_v45 }
 0x19d   : > { %3849 = vmatprep.subr.bf16.mxu1 %v3848_v55  ;;  %v3870_v55 = vpack.c.bf16 %v652_v49, %v588_v48 }
 0x1a2   : > { %2891 = vmatmul.mubr.f32.vlgmr.msra.gmra.mrb[26].mxu0 %v898_v33  ;;  %v587_v33 = vld [vmem:[%s4524_s21 + $0x5e8] sm:$0xff] }
 0x1a3   : > { %3843 = vmatpush1.bf16.xpose.msra.mxu0 %v3842_v3  ;;  %2961 = vmatmul.mubr.f32.vlgmr.msra.gmra.mrb[26].mxu1 %v905_v36  ;;  %v589_v36 = vld [vmem:[%s4524_s21 + $0x5f8] sm:$0xff]  ;;  %v3860_v41 = vpack.c.bf16 %v651_v34, %v587_v33 }
 0x1a4   : > { %3851 = vmatpush1.bf16.xpose.msra.mxu1 %v3850_v4  ;;  %3845 = vmatprep.subr.bf16.mxu0 %v3844_v5  ;;  %v3868_v42 = vpack.c.bf16 %v653_v37, %v589_v36 }
 0x1a5   : > { %v1072_v12 = vpop.f32.mrb[0].mxu0  ;;  %3853 = vmatprep.subr.bf16.mxu1 %v3852_v6  ;;  %3030 = vmatprep.mubr.f32.mxu0 %v923_v7 }
 0x1a6   : > { %v1074_v16 = vpop.f32.mrb[1].mxu0  ;;  %v1142_v17 = vpop.f32.mrb[0].mxu1  ;;  %3100 = vmatprep.mubr.f32.mxu1 %v924_v8 }
 0x1a7   : > { %v1143_v20 = vadd.f32 %v1142_v17, %v1072_v12  ;;  %v1144_v21 = vpop.f32.mrb[1].mxu1 }
 0x1ab   : > { %3847 = vmatpush1.bf16.xpose.msra.mxu0 %v3846_v22 }
 0x1ac   : > { %3855 = vmatpush1.bf16.xpose.msra.mxu1 %v3854_v24  ;;  %3857 = vmatprep.subr.bf16.mxu0 %v3856_v25 }
 0x1ad   : > { %3865 = vmatprep.subr.bf16.mxu1 %v3864_v26 }
 0x1b2   : > { %3031 = vmatmul.mubr.f32.vlgmr.msra.gmra.mrb[28].mxu0 %v915_v63 }
 0x1b3   : > { %3859 = vmatpush1.bf16.xpose.msra.mxu0 %v3858_v39  ;;  %3101 = vmatmul.mubr.f32.vlgmr.msra.gmra.mrb[28].mxu1 %v922_v2 }
 0x1b4   : > { %3867 = vmatpush1.bf16.xpose.msra.mxu1 %v3866_v40  ;;  %3861 = vmatprep.subr.bf16.mxu0 %v3860_v41 }
 0x1b5   : > { %v1212_v47 = vpop.f32.mrb[2].mxu0  ;;  %3869 = vmatprep.subr.bf16.mxu1 %v3868_v42  ;;  %3170 = vmatprep.mubr.f32.mxu0 %v940_v43 }
 0x1b6   : > { %v1213_v28 = vadd.f32 %v1212_v47, %v1143_v20  ;;  %v1214_v50 = vpop.f32.mrb[3].mxu0  ;;  %v1282_v51 = vpop.f32.mrb[2].mxu1  ;;  %3240 = vmatprep.mubr.f32.mxu1 %v941_v44 }
 0x1b7   : > { %v1284_v52 = vpop.f32.mrb[3].mxu1 }
 0x1b8   : > { %v1283_v54 = vadd.f32 %v1282_v51, %v1213_v28 }
 0x1bb   : > { %3863 = vmatpush1.bf16.xpose.msra.mxu0 %v3862_v53 }
 0x1bc   : > { %3871 = vmatpush1.bf16.xpose.msra.mxu1 %v3870_v55 }
 0x1c2   : > { %3171 = vmatmul.mubr.f32.vlgmr.msra.gmra.mrb[30].mxu0 %v932_v35 }
 0x1c3   : > { %3241 = vmatmul.mubr.f32.vlgmr.msra.gmra.mrb[30].mxu1 %v939_v38 }
 0x1c5   : > { %v1352_v56 = vpop.f32.mrb[4].mxu0 }
 0x1c6   : > { %v1353_v57 = vadd.f32 %v1352_v56, %v1283_v54  ;;  %v1354_v58 = vpop.f32.mrb[5].mxu0  ;;  %v1422_v59 = vpop.f32.mrb[4].mxu1 }
 0x1c7   : > { %v1424_v60 = vpop.f32.mrb[5].mxu1 }
 0x1c8   : > { %v1423_v61 = vadd.f32 %v1422_v59, %v1353_v57 }
 0x1d5   : > { %v1492_v62 = vpop.f32.mrb[6].mxu0 }
 0x1d6   : > { %v1493_v63 = vadd.f32 %v1492_v62, %v1423_v61  ;;  %v1494_v0 = vpop.f32.mrb[7].mxu0  ;;  %v1562_v1 = vpop.f32.mrb[6].mxu1 }
 0x1d7   : > { %v1564_v2 = vpop.f32.mrb[7].mxu1 }
 0x1d8   : > { %v1563_v3 = vadd.f32 %v1562_v1, %v1493_v63 }
 0x1e5   : > { %v1632_v4 = vpop.f32.mrb[8].mxu0 }
 0x1e6   : > { %v1633_v5 = vadd.f32 %v1632_v4, %v1563_v3  ;;  %v1634_v6 = vpop.f32.mrb[9].mxu0  ;;  %v1702_v7 = vpop.f32.mrb[8].mxu1 }
 0x1e7   : > { %v1704_v8 = vpop.f32.mrb[9].mxu1 }
 0x1e8   : > { %v1703_v9 = vadd.f32 %v1702_v7, %v1633_v5 }
 0x1f5   : > { %v1772_v10 = vpop.f32.mrb[10].mxu0 }
 0x1f6   : > { %v1773_v11 = vadd.f32 %v1772_v10, %v1703_v9  ;;  %v1774_v12 = vpop.f32.mrb[11].mxu0  ;;  %v1842_v13 = vpop.f32.mrb[10].mxu1  ;;  %v381_v10 = vld [vmem:[#allocation2] sm:$0x3] }
 0x1f7   : > { %v1844_v14 = vpop.f32.mrb[11].mxu1 }
 0x1f8   : > { %v1843_v15 = vadd.f32 %v1842_v13, %v1773_v11  ;;  %v3263_v14 = vld [vmem:[#allocation8] sm:$0xff] (!%p3573_p5) }
 0x205   : > { %v1912_v16 = vpop.f32.mrb[12].mxu0 }
 0x206   : > { %v1913_v17 = vadd.f32 %v1912_v16, %v1843_v15  ;;  %v1914_v18 = vpop.f32.mrb[13].mxu0  ;;  %v1982_v19 = vpop.f32.mrb[12].mxu1  ;;  %v3264_v15 = vld [vmem:[#allocation8 + $0x8] sm:$0xff] (!%p3573_p5)  ;;  %v3265_v16 = vld [vmem:[#allocation8 + $0x10] sm:$0xff] (!%p3573_p5) }
 0x207   : > { %v1984_v20 = vpop.f32.mrb[13].mxu1  ;;  %v3873_v18 = vpack.c.bf16 (!%p3573_p5), %v3264_v15, %v3263_v14 }
 0x208   : > { %v1983_v21 = vadd.f32 %v1982_v19, %v1913_v17  ;;  %v4268_v17 = vmov (!%p3573_p5), 0.0|0.0   ;;  %v3266_v19 = vld [vmem:[#allocation8 + $0x18] sm:$0xff] (!%p3573_p5)  ;;  %v4270_v20 = vmov (!%p3573_p5), 0.0  }
 0x209   : > { %3872 = vmatprep.subr.bf16.mxu0 (!%p3573_p5), %v4268_v17  ;;  %3602 = vmatprep.mubr.msk.f32.mxu0 (!%p3573_p5), %vm4269_vm2, %v4270_v20 }
 0x20a   : > { %3878 = vmatprep.subr.bf16.mxu1 (!%p3573_p5), %v4268_v17  ;;  %3613 = vmatprep.mubr.msk.f32.mxu1 (!%p3573_p5), %vm4269_vm2, %v4270_v20 }
 0x20b   : > { %3874 = vmatpush3.bf16.msra.mxu0 (!%p3573_p5), %v3873_v18 }
 0x20c   : > { %3875 = vmatprep.subr.bf16.mxu0 (!%p3573_p5), %v4268_v17 }
 0x215   : > { %v2052_v22 = vpop.f32.mrb[14].mxu0 }
 0x216   : > { %v2053_v23 = vadd.f32 %v2052_v22, %v1983_v21  ;;  %v2054_v24 = vpop.f32.mrb[15].mxu0  ;;  %v2122_v25 = vpop.f32.mrb[14].mxu1  ;;  %v3574_v22 = vld [vmem:[#allocation6] ss:$0 sm:$0xff] (!%p3573_p5) }
 0x217   : > { %v2124_v26 = vpop.f32.mrb[15].mxu1  ;;  %v3349_v24 = vld [vmem:[#allocation11] sm:$0xff] (!%p3573_p5) }
 0x218   : > { %v2123_v27 = vadd.f32 %v2122_v25, %v2053_v23  ;;  %v3350_v25 = vld [vmem:[#allocation11 + $0x8] sm:$0xff] (!%p3573_p5)  ;;  %v3876_v26 = vpack.c.bf16 (!%p3573_p5), %v3266_v19, %v3265_v16 }
 0x21a   : > { %3877 = vmatpush3.bf16.msra.mxu0 (!%p3573_p5), %v3876_v26 }
 0x225   : > { %v2192_v29 = vpop.f32.mrb[16].mxu0 }
 0x226   : > { %v2193_v30 = vadd.f32 %v2192_v29, %v2123_v27  ;;  %v2194_v31 = vpop.f32.mrb[17].mxu0  ;;  %v2262_v32 = vpop.f32.mrb[16].mxu1  ;;  %v3879_v27 = vpack.c.bf16 (!%p3573_p5), %v3350_v25, %v3349_v24 }
 0x227   : > { %v2264_v33 = vpop.f32.mrb[17].mxu1  ;;  %v3352_v31 = vld [vmem:[#allocation11 + $0x18] sm:$0xff] (!%p3573_p5) }
 0x228   : > { %v2263_v34 = vadd.f32 %v2262_v32, %v2193_v30  ;;  %3880 = vmatpush3.bf16.msra.mxu1 (!%p3573_p5), %v3879_v27  ;;  %v3351_v30 = vld [vmem:[#allocation11 + $0x10] sm:$0xff] (!%p3573_p5)  ;;  %v3575_v33 = vld [vmem:[#allocation9] ss:$0 sm:$0xff] (!%p3573_p5) }
 0x229   : > { %3881 = vmatprep.subr.bf16.mxu1 (!%p3573_p5), %v4268_v17  ;;  %v3882_v32 = vpack.c.bf16 (!%p3573_p5), %v3352_v31, %v3351_v30 }
 0x22c   : > { %3883 = vmatpush3.bf16.msra.mxu1 (!%p3573_p5), %v3882_v32 }
 0x235   : > { %v2332_v35 = vpop.f32.mrb[18].mxu0 }
 0x236   : > { %v2333_v36 = vadd.f32 %v2332_v35, %v2263_v34  ;;  %v2334_v37 = vpop.f32.mrb[19].mxu0  ;;  %v2402_v38 = vpop.f32.mrb[18].mxu1 }
 0x237   : > { %v2404_v39 = vpop.f32.mrb[19].mxu1 }
 0x238   : > { %v2403_v40 = vadd.f32 %v2402_v38, %v2333_v36  ;;  %v3577_v38 = vld [vmem:[#allocation12] ss:$0 sm:$0xff] (!%p3573_p5) }
 0x245   : > { %v2472_v41 = vpop.f32.mrb[20].mxu0 }
 0x246   : > { %v2473_v42 = vadd.f32 %v2472_v41, %v2403_v40  ;;  %v2474_v43 = vpop.f32.mrb[21].mxu0  ;;  %v2542_v44 = vpop.f32.mrb[20].mxu1 }
 0x247   : > { %v2544_v45 = vpop.f32.mrb[21].mxu1 }
 0x248   : > { %v2543_v46 = vadd.f32 %v2542_v44, %v2473_v42 }
 0x255   : > { %v2612_v47 = vpop.f32.mrb[22].mxu0 }
 0x256   : > { %v2613_v48 = vadd.f32 %v2612_v47, %v2543_v46  ;;  %v2614_v49 = vpop.f32.mrb[23].mxu0  ;;  %v2682_v28 = vpop.f32.mrb[22].mxu1 }
 0x257   : > { %v2684_v50 = vpop.f32.mrb[23].mxu1 }
 0x258   : > { %v2683_v51 = vadd.f32 %v2682_v28, %v2613_v48 }
 0x265   : > { %v2752_v52 = vpop.f32.mrb[24].mxu0 }
 0x266   : > { %v2753_v53 = vadd.f32 %v2752_v52, %v2683_v51  ;;  %v2754_v54 = vpop.f32.mrb[25].mxu0  ;;  %v2822_v55 = vpop.f32.mrb[24].mxu1 }
 0x267   : > { %v2824_v56 = vpop.f32.mrb[25].mxu1 }
 0x268   : > { %v2823_v57 = vadd.f32 %v2822_v55, %v2753_v53 }
 0x275   : > { %v2892_v58 = vpop.f32.mrb[26].mxu0 }
 0x276   : > { %v2893_v59 = vadd.f32 %v2892_v58, %v2823_v57  ;;  %v2894_v60 = vpop.f32.mrb[27].mxu0  ;;  %v2962_v61 = vpop.f32.mrb[26].mxu1 }
 0x277   : > { %v2964_v62 = vpop.f32.mrb[27].mxu1 }
 0x278   : > { %v2963_v63 = vadd.f32 %v2962_v61, %v2893_v59 }
 0x285   : > { %v3032_v0 = vpop.f32.mrb[28].mxu0 }
 0x286   : > { %v3033_v1 = vadd.f32 %v3032_v0, %v2963_v63  ;;  %v3034_v2 = vpop.f32.mrb[29].mxu0  ;;  %v3102_v3 = vpop.f32.mrb[28].mxu1 }
 0x287   : > { %v3104_v4 = vpop.f32.mrb[29].mxu1 }
 0x288   : > { %v3103_v5 = vadd.f32 %v3102_v3, %v3033_v1 }
 0x295   : > { %v3172_v6 = vpop.f32.mrb[30].mxu0 }
 0x296   : > { %v3173_v7 = vadd.f32 %v3172_v6, %v3103_v5  ;;  %v3174_v8 = vpop.f32.mrb[31].mxu0  ;;  %v3242_v9 = vpop.f32.mrb[30].mxu1  ;;  %3252 = sbr.rel (%p3573_p5) target bundleno = 1111 (0x457), region = 80 }
 0x297   : > { %v3244_v11 = vpop.f32.mrb[31].mxu1 }
 0x298   : > { %v3243_v12 = vadd.f32 %v3242_v9, %v3173_v7 }
 0x29a   : > { %v3246_v13 = vadd.f32 %v3243_v12, %v381_v10 }
 0x29c   : > { %3248 = vst.msk [vmem:[#allocation2] sm:$0x3] %vm3247_vm1, %v3246_v13 }
 0x2a3   : > { %v3253_v21 = vld [vmem:[#allocation2] sm:$0x3] }
 0x2a4   : > { %v3261_v23 = vadd.f32 %v3574_v22, %v3253_v21 }
 0x2a6   : > { %v3262_v29 = vmax.f32 %v3261_v23, 0.0 }
 0x2a8   : > { %3603 = vmatmul.mubr.msk.f32.vlgmr.msra.gmra.mrb[0].mxu0 %vm3274_vm3, %v3262_v29 }
 0x37b   : > { %v3344_v34 = vpop.f32.mrb[0].mxu0 }
 0x37c   : > { %v3345_v35 = vadd.f32 %v3575_v33, %v3344_v34  ;;  %v3604_v36 = vpop.f32.mrb[1].mxu0 }
 0x37e   : > { %v3348_v37 = vmax.f32 %v3345_v35, 0.0 }
 0x380   : > { %3614 = vmatmul.mubr.msk.f32.vlgmr.msra.gmra.mrb[0].mxu1 %vm3274_vm3, %v3348_v37 }
 0x453   : > { %v3429_v39 = vpop.f32.mrb[0].mxu1 }
 0x454   : > { %v3430_v40 = vadd.f32 %v3577_v38, %v3429_v39  ;;  %v3615_v41 = vpop.f32.mrb[1].mxu1 }
 0x456   : > { %3434 = vst.msk [vmem:[#allocation14] sm:$0x3] %vm3433_vm4, %v3430_v40 }
 0x457 PF: > { %p3941_p12 = scmp.eq.s32.totalorder %s4331_s28, 4  ;;  %s4271_s27 = smov [#allocation14]  }
 0x458   : > { %s3442_s24 = sshll.u32 %s4271_s27, 4  ;;  %s3443_s24 = int_to_ptr.vmem [resolvable:$true] %s3442_s24 }
 0x459   : > { %s4177_s11 = scalar_lea.vmem %s3443_s24, 32  ;;  %p4184_p13 = scmp.lt.s32.totalorder %s3443_s24, %s3443_s24 }
 0x45a   : > { %p4178_p0 = scmp.ne.s32.totalorder %s3443_s24, %s4177_s11  ;;  %p4185_p3 = scmp.lt.s32.totalorder %s4177_s11, %s4177_s11 }
 0x45c   : > { %p4179_p2 = pnand %p4178_p0, %p3941_p12  ;;  %p4186_p8 = por %p4185_p3, %p4184_p13 }
 0x45e   : > { %p4180_p6 = pneg %p4179_p2 }
 0x460   : > { %p4187_p7 = pnand %p4186_p8, %p4180_p6 }
 0x462   : > { %4190 = shalt.err (!%p4187_p7)
}
 0x463   : > { %s4191_s22 = scalar_lea.hbm %s4900_s7, 32 }
 0x464   : > { %p4192_p10 = scmp.ne.s32.totalorder %s4900_s7, %s4191_s22  ;;  %p4197_p1 = scmp.lt.u32.totalorder %s4191_s22, %s4900_s7 }
 0x466   : > { %p4193_p9 = pnand %p4192_p10, %p3941_p12 }
 0x468   : > { %p4194_p11 = pneg %p4193_p9 }
 0x46a   : > { %p4199_p4 = pnand %p4197_p1, %p4194_p11 }
 0x46c   : > { %4202 = shalt.err (!%p4199_p4)
}
 0x46d   : > { %3907 = dma.vmem_to_hbm [thread:$0]  (%p3941_p12), %s3443_s24, 32, %s4900_s7, [#allocation5]  }
 0x46e   : > { %4236 = dma.done.wait (%p3941_p12), [#allocation5], 32  }
 0x46f   : > { %4238 = vsyncadd (%p3941_p12), [#allocation5], 4294967264 }
 0x470 PF: > { %p21_p5 = scmp.ge.s32.totalorder %s4468_s20, 7   ;;  %s4920_s24 = smov %s4245_s25 }
 0x471   : > { %s4921_s25 = smov %s4249_s26  ;;  %s4922_s26 = smov %s4478_s12 }
 0x472   : > { %s4923_s27 = smov %s4468_s20  ;;  %23 = sbr.rel (!%p21_p5) target bundleno = 9 (0x9), region = 116 }
 0x479   :  { %3455 = vsyncpa [#allocation4], 1 }
 0x47a   :  { %3457 = vsyncpa [#allocation4 + $0x1], 1 }
 0x47b   :  { %3458 = vsyncpa [#allocation7], 1 }
 0x47c   :  { %3459 = vsyncpa [#allocation10], 1 }
 0x47d   :  { %3460 = vsyncpa [#allocation13], 1 }
 0x47e   :  { %3461 = vsyncpa [#allocation5], 1 }
 0x47f   :  { %3463 = vsyncpa [#allocation5 + $0x1], 1 }

</bundles_post_ra>
